<compile_context>
chip_gen: v7x
topology: tpu7x:2x2x1
jax: 0.10.0
libtpu: 0.0.40
codegen_flags: <defaults>
</compile_context>

<pallas_src>
import jax
import jax.numpy as jnp
from jax.experimental import pallas as pl
from jax.experimental.pallas import tpu as pltpu


def _make_ncf_kernel(num_layers, tile_b):
    """Builds the NeuMF-end forward kernel for a fixed number of MLP layers."""

    def kernel(*refs):
        # ---- unpack (order: scalar-prefetch, inputs, outputs, scratch) ----
        uid_ref, iid_ref = refs[0], refs[1]            # SMEM int32 ids (whole padded batch)
        utab_ref, itab_ref = refs[2], refs[3]          # VMEM-resident combined tables
        pos = 4
        w1u_ref, w1i_ref, b1_ref = refs[pos:pos + 3]
        pos += 3
        mlp_rest = []
        for _ in range(num_layers - 1):
            mlp_rest.append((refs[pos], refs[pos + 1]))
            pos += 2
        wpg_ref, wpm_ref, bp_ref = refs[pos:pos + 3]
        pos += 3
        o_ref = refs[pos]
        pos += 1
        u_buf, i_buf = refs[pos], refs[pos + 1]        # (tile_b, F+Fm) gather scratch

        base = pl.program_id(0) * tile_b

        # ---- embedding gather: in-VMEM dynamic row loads (no DMA descriptors) ----
        @pl.loop(0, tile_b)
        def _gather(r):
            u = uid_ref[base + r]
            it = iid_ref[base + r]
            u_buf[pl.ds(r, 1), :] = utab_ref[pl.ds(u, 1), :]
            i_buf[pl.ds(r, 1), :] = itab_ref[pl.ds(it, 1), :]

        f32 = jnp.float32
        u_all = u_buf[...].astype(f32)                 # (TB, F+Fm) = [u_gmf | u_mlp]
        i_all = i_buf[...].astype(f32)                 # (TB, F+Fm) = [i_gmf | i_mlp]

        # GMF branch (VPU elementwise); folded into the predict head through the
        # zero-extended predict row, so no lane-unaligned slicing is needed.
        prod = u_all * i_all                           # (TB, F+Fm)

        # MLP branch.  concat([u_m, i_m]) @ W1 == u_all @ [0;W1_top] + i_all @ [0;W1_bot]
        # (weights zero-padded in the wrapper -> no concat / slice in-kernel).
        x = (jnp.dot(u_all, w1u_ref[...], preferred_element_type=f32)
             + jnp.dot(i_all, w1i_ref[...], preferred_element_type=f32)
             + b1_ref[...])
        x = jnp.maximum(x, 0.0)
        # TODO(synk): on v6e/v7x, casting x / weights to bf16 before jnp.dot gives ~3x
        # MXU throughput; kept f32 here for numerical parity with the PyTorch module.
        for w_ref, b_ref in mlp_rest:
            x = jnp.maximum(
                jnp.dot(x, w_ref[...], preferred_element_type=f32) + b_ref[...], 0.0)

        # Predict head: N=1 matmul replaced by VPU multiply + lane reduction
        # (MXU stays free; wpg is zero past the GMF lanes, wpm covers the MLP output).
        pred = (jnp.sum(prod * wpg_ref[...], axis=-1, keepdims=True)
                + jnp.sum(x * wpm_ref[...], axis=-1, keepdims=True)
                + bp_ref[...])                         # (TB, 1)
        o_ref[...] = pred.astype(o_ref.dtype)

    return kernel


def ncf_forward(user_id, item_id, params, *, tile_b=256):
    """NeuMF-end forward (eval mode).  Embedding gather, MLP and predict head all
    run in one batch-tiled Pallas kernel with VMEM-resident tables and weights."""
    eu_gmf = params["embed_user_GMF"]
    ei_gmf = params["embed_item_GMF"]
    eu_mlp = params["embed_user_MLP"]
    ei_mlp = params["embed_item_MLP"]
    mlp_w = params["mlp_w"]            # list of (in, out) matrices (pre-transposed)
    mlp_b = params["mlp_b"]            # list of (1, out)
    wp = params["predict_w"]           # (1, 2F)
    bp = params["predict_b"]           # (1, 1)

    num_layers = len(mlp_w)
    F = eu_gmf.shape[1]
    Fm = eu_mlp.shape[1]
    assert mlp_w[0].shape[0] == 2 * Fm and mlp_w[-1].shape[1] == F

    f32 = jnp.float32
    # Combined per-entity tables: one wide row load per (user, item) instead of four.
    user_tab = jnp.concatenate([eu_gmf, eu_mlp], axis=1)      # (U, F+Fm)
    item_tab = jnp.concatenate([ei_gmf, ei_mlp], axis=1)      # (I, F+Fm)

    B = user_id.shape[0]
    n_tiles = pl.cdiv(B, tile_b)
    B_pad = n_tiles * tile_b
    uid = jnp.pad(user_id.astype(jnp.int32), (0, B_pad - B))  # pad rows gather row 0
    iid = jnp.pad(item_id.astype(jnp.int32), (0, B_pad - B))

    # First MLP layer: split for concat elimination, zero-extended by F rows so it
    # applies directly to the combined [gmf | mlp] embedding rows.
    h1 = mlp_w[0].shape[1]
    zF = jnp.zeros((F, h1), f32)
    w1u = jnp.concatenate([zF, mlp_w[0][:Fm].astype(f32)], axis=0)   # (F+Fm, h1)
    w1i = jnp.concatenate([zF, mlp_w[0][Fm:].astype(f32)], axis=0)   # (F+Fm, h1)
    # Predict row: GMF part zero-extended to the combined-table width.
    wp_gmf = jnp.concatenate([wp[:, :F].astype(f32), jnp.zeros((1, Fm), f32)], axis=1)
    wp_mlp = wp[:, F:].astype(f32)

    # Weights stored in the compute dtype -> no per-tile upcasts inside the kernel.
    weight_args = [w1u, w1i, mlp_b[0].astype(f32)]
    for l in range(1, num_layers):
        weight_args += [mlp_w[l].astype(f32), mlp_b[l].astype(f32)]
    weight_args += [wp_gmf, wp_mlp, bp.astype(f32)]

    def const_spec(a):
        # Whole array as one VMEM-resident block; constant index_map -> fetched once.
        return pl.BlockSpec(a.shape, lambda i, uid_r, iid_r: (0, 0))

    in_specs = ([const_spec(user_tab), const_spec(item_tab)]
                + [const_spec(a) for a in weight_args])

    grid_spec = pltpu.PrefetchScalarGridSpec(
        num_scalar_prefetch=2,                 # user ids, item ids -> SMEM
        grid=(n_tiles,),
        in_specs=in_specs,
        out_specs=pl.BlockSpec((tile_b, 1), lambda i, uid_r, iid_r: (i, 0)),
        scratch_shapes=[
            pltpu.VMEM((tile_b, F + Fm), user_tab.dtype),
            pltpu.VMEM((tile_b, F + Fm), item_tab.dtype),
        ],
    )

    matmul_flops = 2 * B_pad * (int(w1u.size) + int(w1i.size)
                                + sum(int(w.size) for w in mlp_w[1:]))
    head_flops = B_pad * (3 * (F + Fm) + 3 * F)
    bytes_accessed = (int(user_tab.size + item_tab.size) * user_tab.dtype.itemsize
                      + sum(int(a.size) * a.dtype.itemsize for a in weight_args)
                      + 3 * B_pad * 4)
    cost = pl.CostEstimate(flops=int(matmul_flops + head_flops), transcendentals=0,
                           bytes_accessed=int(bytes_accessed))

    out = pl.pallas_call(
        _make_ncf_kernel(num_layers, tile_b),
        out_shape=jax.ShapeDtypeStruct((B_pad, 1), jnp.float32),
        grid_spec=grid_spec,
        compiler_params=pltpu.CompilerParams(dimension_semantics=("parallel",)),
        cost_estimate=cost,
    )(uid, iid, user_tab, item_tab, *weight_args)

    return out.reshape(-1)[:B]


def init_params(key, user_num, item_num, factor_num, num_layers, emb_dtype=jnp.float32):
    """Mirrors NCF_GitHub._init_weight_ for the NeuMF-end case (approximate dists)."""
    Fm = factor_num * 2 ** (num_layers - 1)
    ks = list(jax.random.split(key, 5 + num_layers))
    p = {
        "embed_user_GMF": (0.01 * jax.random.normal(ks[0], (user_num, factor_num))).astype(emb_dtype),
        "embed_item_GMF": (0.01 * jax.random.normal(ks[1], (item_num, factor_num))).astype(emb_dtype),
        "embed_user_MLP": (0.01 * jax.random.normal(ks[2], (user_num, Fm))).astype(emb_dtype),
        "embed_item_MLP": (0.01 * jax.random.normal(ks[3], (item_num, Fm))).astype(emb_dtype),
    }
    mlp_w, mlp_b = [], []
    for i in range(num_layers):
        fan_in = factor_num * 2 ** (num_layers - i)
        fan_out = fan_in // 2
        bound = (6.0 / (fan_in + fan_out)) ** 0.5              # xavier_uniform
        w = jax.random.uniform(ks[4 + i], (fan_in, fan_out), jnp.float32, -bound, bound)
        mlp_w.append(w)
        mlp_b.append(jnp.zeros((1, fan_out), jnp.float32))     # PyTorch init zeros biases
    fan_in = 2 * factor_num
    bound = (3.0 / fan_in) ** 0.5                              # ~ kaiming_uniform(a=1)
    p["mlp_w"] = mlp_w
    p["mlp_b"] = mlp_b
    p["predict_w"] = jax.random.uniform(ks[-1], (1, 2 * factor_num), jnp.float32, -bound, bound)
    p["predict_b"] = jnp.zeros((1, 1), jnp.float32)
    return p


if __name__ == "__main__":
    user_num, item_num = 600, 900
    factor_num = 32
    num_layers = 3            # MLP: 256 -> 128 -> 64 -> 32
    batch = 200               # not a multiple of the tiles -> exercises padding

    key = jax.random.PRNGKey(0)
    kp, ku, ki = jax.random.split(key, 3)

    params = init_params(kp, user_num, item_num, factor_num, num_layers)
    user_id = jax.random.randint(ku, (batch,), 0, user_num, dtype=jnp.int32)
    item_id = jax.random.randint(ki, (batch,), 0, item_num, dtype=jnp.int32)

    # Pure-JAX reference of the NeuMF-end forward.
    with jax.default_matmul_precision("highest"):
        f32 = jnp.float32
        u_g = jnp.take(params["embed_user_GMF"], user_id, axis=0).astype(f32)
        i_g = jnp.take(params["embed_item_GMF"], item_id, axis=0).astype(f32)
        u_m = jnp.take(params["embed_user_MLP"], user_id, axis=0).astype(f32)
        i_m = jnp.take(params["embed_item_MLP"], item_id, axis=0).astype(f32)
        gmf = u_g * i_g
        x = jnp.concatenate([u_m, i_m], axis=-1)
        for w, b in zip(params["mlp_w"], params["mlp_b"]):
            x = jnp.maximum(x @ w + b, 0.0)
        concat = jnp.concatenate([gmf, x], axis=-1)
        ref = jnp.sum(concat * params["predict_w"], axis=-1) + params["predict_b"][0, 0]

    # tile_b=128 -> 2 grid steps (multi-tile + ragged padding; also keeps both v7x
    # TensorCores busy); tile_b=256 -> single larger tile.
    for tb in (128, 256):
        out = ncf_forward(user_id, item_id, params, tile_b=tb)
        jax.block_until_ready(out)
        assert out.shape == (batch,)
        max_err = float(jnp.max(jnp.abs(out - ref)))
        assert jnp.allclose(out, ref, atol=3e-5, rtol=3e-3), \
            f"tile_b={tb}: max abs err = {max_err}"

    print("KERNEL_OK")
</pallas_src>

<mosaic_0001>
module attributes {stable_mosaic.version = 11 : i64} {
  func.func @kernel(%arg0: i32, %arg1: memref<256xi32, #tpu.memory_space<smem>>, %arg2: memref<256xi32, #tpu.memory_space<smem>>, %arg3: memref<600x160xf32, #tpu.memory_space<vmem>>, %arg4: memref<900x160xf32, #tpu.memory_space<vmem>>, %arg5: memref<160x128xf32, #tpu.memory_space<vmem>>, %arg6: memref<160x128xf32, #tpu.memory_space<vmem>>, %arg7: memref<1x128xf32, #tpu.memory_space<vmem>>, %arg8: memref<128x64xf32, #tpu.memory_space<vmem>>, %arg9: memref<1x64xf32, #tpu.memory_space<vmem>>, %arg10: memref<64x32xf32, #tpu.memory_space<vmem>>, %arg11: memref<1x32xf32, #tpu.memory_space<vmem>>, %arg12: memref<1x160xf32, #tpu.memory_space<vmem>>, %arg13: memref<1x32xf32, #tpu.memory_space<vmem>>, %arg14: memref<1x1xf32, #tpu.memory_space<vmem>>, %arg15: memref<128x1xf32, #tpu.memory_space<vmem>>, %arg16: memref<128x160xf32, #tpu.memory_space<vmem>>, %arg17: memref<128x160xf32, #tpu.memory_space<vmem>>) attributes {dimension_semantics = [#tpu.dimension_semantics<parallel>], iteration_bounds = array<i64: 2>, scalar_prefetch = 2 : i64, scratch_operands = 2 : i64, tpu.core_type = #tpu.core_type<tc>, window_params = [{pipeline_mode = #tpu.pipeline_mode<synchronous>, transform_indices = @transform_0, window_bounds = array<i64: 600, 160>}, {pipeline_mode = #tpu.pipeline_mode<synchronous>, transform_indices = @transform_1, window_bounds = array<i64: 900, 160>}, {pipeline_mode = #tpu.pipeline_mode<synchronous>, transform_indices = @transform_2, window_bounds = array<i64: 160, 128>}, {pipeline_mode = #tpu.pipeline_mode<synchronous>, transform_indices = @transform_3, window_bounds = array<i64: 160, 128>}, {pipeline_mode = #tpu.pipeline_mode<synchronous>, transform_indices = @transform_4, window_bounds = array<i64: 1, 128>}, {pipeline_mode = #tpu.pipeline_mode<synchronous>, transform_indices = @transform_5, window_bounds = array<i64: 128, 64>}, {pipeline_mode = #tpu.pipeline_mode<synchronous>, transform_indices = @transform_6, window_bounds = array<i64: 1, 64>}, {pipeline_mode = #tpu.pipeline_mode<synchronous>, transform_indices = @transform_7, window_bounds = array<i64: 64, 32>}, {pipeline_mode = #tpu.pipeline_mode<synchronous>, transform_indices = @transform_8, window_bounds = array<i64: 1, 32>}, {pipeline_mode = #tpu.pipeline_mode<synchronous>, transform_indices = @transform_9, window_bounds = array<i64: 1, 160>}, {pipeline_mode = #tpu.pipeline_mode<synchronous>, transform_indices = @transform_10, window_bounds = array<i64: 1, 32>}, {pipeline_mode = #tpu.pipeline_mode<synchronous>, transform_indices = @transform_11, window_bounds = array<i64: 1, 1>}, {transform_indices = @transform_12, window_bounds = array<i64: 128, 1>}]} {
    %c128_i32 = arith.constant 128 : i32
    %0 = arith.muli %arg0, %c128_i32 : i32
    %c0_i32 = arith.constant 0 : i32
    %c128_i32_0 = arith.constant 128 : i32
    %1 = arith.addi %c0_i32, %c128_i32_0 : i32
    %c1_i32 = arith.constant 1 : i32
    scf.for %arg18 = %c0_i32 to %1 step %c1_i32  : i32 {
      %c1_i32_35 = arith.constant 1 : i32
      %44 = arith.muli %arg18, %c1_i32_35 : i32
      %c0_i32_36 = arith.constant 0 : i32
      %45 = arith.addi %c0_i32_36, %44 : i32
      %46 = arith.addi %0, %45 : i32
      %47 = arith.index_cast %46 : i32 to index
      %48 = memref.load %arg1[%47] : memref<256xi32, #tpu.memory_space<smem>>
      %49 = arith.addi %0, %45 : i32
      %50 = arith.index_cast %49 : i32 to index
      %51 = memref.load %arg2[%50] : memref<256xi32, #tpu.memory_space<smem>>
      %52 = arith.index_cast %48 : i32 to index
      %c0_37 = arith.constant 0 : index
      %53 = vector.load %arg3[%52, %c0_37] : memref<600x160xf32, #tpu.memory_space<vmem>>, vector<1x160xf32>
      %54 = arith.index_cast %45 : i32 to index
      %c0_38 = arith.constant 0 : index
      %55 = vector.load %arg16[%54, %c0_38] : memref<128x160xf32, #tpu.memory_space<vmem>>, vector<1x160xf32>
      tpu.vector_store %arg16[%54, %c0_38], %53 {strides = array<i32>} : memref<128x160xf32, #tpu.memory_space<vmem>>, vector<1x160xf32>,
      %56 = arith.index_cast %51 : i32 to index
      %c0_39 = arith.constant 0 : index
      %57 = vector.load %arg4[%56, %c0_39] : memref<900x160xf32, #tpu.memory_space<vmem>>, vector<1x160xf32>
      %58 = arith.index_cast %45 : i32 to index
      %c0_40 = arith.constant 0 : index
      %59 = vector.load %arg17[%58, %c0_40] : memref<128x160xf32, #tpu.memory_space<vmem>>, vector<1x160xf32>
      tpu.vector_store %arg17[%58, %c0_40], %57 {strides = array<i32>} : memref<128x160xf32, #tpu.memory_space<vmem>>, vector<1x160xf32>,
    }
    %c128_i32_1 = arith.constant 128 : i32
    %c0 = arith.constant 0 : index
    %c0_2 = arith.constant 0 : index
    %2 = vector.load %arg16[%c0, %c0_2] : memref<128x160xf32, #tpu.memory_space<vmem>>, vector<128x160xf32>
    %c0_3 = arith.constant 0 : index
    %c0_4 = arith.constant 0 : index
    %3 = vector.load %arg17[%c0_3, %c0_4] : memref<128x160xf32, #tpu.memory_space<vmem>>, vector<128x160xf32>
    %4 = arith.mulf %2, %3 : vector<128x160xf32>
    %c0_5 = arith.constant 0 : index
    %c0_6 = arith.constant 0 : index
    %5 = vector.load %arg5[%c0_5, %c0_6] : memref<160x128xf32, #tpu.memory_space<vmem>>, vector<160x128xf32>
    %cst = arith.constant dense<0.000000e+00> : vector<128x128xf32>
    %6 = tpu.matmul %2, %5, %cst {dimension_numbers = #tpu.dot_dimension_numbers<[1], [0], [0], [1], [0, 0, 1, 1], [], []>} : vector<128x160xf32>, vector<160x128xf32>, vector<128x128xf32> -> vector<128x128xf32>
    %c0_7 = arith.constant 0 : index
    %c0_8 = arith.constant 0 : index
    %7 = vector.load %arg6[%c0_7, %c0_8] : memref<160x128xf32, #tpu.memory_space<vmem>>, vector<160x128xf32>
    %cst_9 = arith.constant dense<0.000000e+00> : vector<128x128xf32>
    %8 = tpu.matmul %3, %7, %cst_9 {dimension_numbers = #tpu.dot_dimension_numbers<[1], [0], [0], [1], [0, 0, 1, 1], [], []>} : vector<128x160xf32>, vector<160x128xf32>, vector<128x128xf32> -> vector<128x128xf32>
    %9 = arith.addf %6, %8 : vector<128x128xf32>
    %c0_10 = arith.constant 0 : index
    %c0_11 = arith.constant 0 : index
    %10 = vector.load %arg7[%c0_10, %c0_11] : memref<1x128xf32, #tpu.memory_space<vmem>>, vector<1x128xf32>
    %11 = vector.broadcast %10 : vector<1x128xf32> to vector<128x128xf32>
    %12 = arith.addf %9, %11 : vector<128x128xf32>
    %cst_12 = arith.constant 0.000000e+00 : f32
    %13 = vector.broadcast %cst_12 : f32 to vector<128x128xf32>
    %14 = arith.maximumf %12, %13 : vector<128x128xf32>
    %c0_13 = arith.constant 0 : index
    %c0_14 = arith.constant 0 : index
    %15 = vector.load %arg8[%c0_13, %c0_14] : memref<128x64xf32, #tpu.memory_space<vmem>>, vector<128x64xf32>
    %cst_15 = arith.constant dense<0.000000e+00> : vector<128x64xf32>
    %16 = tpu.matmul %14, %15, %cst_15 {dimension_numbers = #tpu.dot_dimension_numbers<[1], [0], [0], [1], [0, 0, 1, 1], [], []>} : vector<128x128xf32>, vector<128x64xf32>, vector<128x64xf32> -> vector<128x64xf32>
    %c0_16 = arith.constant 0 : index
    %c0_17 = arith.constant 0 : index
    %17 = vector.load %arg9[%c0_16, %c0_17] : memref<1x64xf32, #tpu.memory_space<vmem>>, vector<1x64xf32>
    %18 = vector.broadcast %17 : vector<1x64xf32> to vector<128x64xf32>
    %19 = arith.addf %16, %18 : vector<128x64xf32>
    %cst_18 = arith.constant 0.000000e+00 : f32
    %20 = vector.broadcast %cst_18 : f32 to vector<128x64xf32>
    %21 = arith.maximumf %19, %20 : vector<128x64xf32>
    %c0_19 = arith.constant 0 : index
    %c0_20 = arith.constant 0 : index
    %22 = vector.load %arg10[%c0_19, %c0_20] : memref<64x32xf32, #tpu.memory_space<vmem>>, vector<64x32xf32>
    %cst_21 = arith.constant dense<0.000000e+00> : vector<128x32xf32>
    %23 = tpu.matmul %21, %22, %cst_21 {dimension_numbers = #tpu.dot_dimension_numbers<[1], [0], [0], [1], [0, 0, 1, 1], [], []>} : vector<128x64xf32>, vector<64x32xf32>, vector<128x32xf32> -> vector<128x32xf32>
    %c0_22 = arith.constant 0 : index
    %c0_23 = arith.constant 0 : index
    %24 = vector.load %arg11[%c0_22, %c0_23] : memref<1x32xf32, #tpu.memory_space<vmem>>, vector<1x32xf32>
    %25 = vector.broadcast %24 : vector<1x32xf32> to vector<128x32xf32>
    %26 = arith.addf %23, %25 : vector<128x32xf32>
    %cst_24 = arith.constant 0.000000e+00 : f32
    %27 = vector.broadcast %cst_24 : f32 to vector<128x32xf32>
    %28 = arith.maximumf %26, %27 : vector<128x32xf32>
    %c0_25 = arith.constant 0 : index
    %c0_26 = arith.constant 0 : index
    %29 = vector.load %arg12[%c0_25, %c0_26] : memref<1x160xf32, #tpu.memory_space<vmem>>, vector<1x160xf32>
    %30 = vector.broadcast %29 : vector<1x160xf32> to vector<128x160xf32>
    %31 = arith.mulf %4, %30 : vector<128x160xf32>
    %cst_27 = arith.constant dense<0.000000e+00> : vector<128xf32>
    %32 = vector.multi_reduction <add>, %31, %cst_27 [1] : vector<128x160xf32> to vector<128xf32>
    %33 = vector.shape_cast %32 : vector<128xf32> to vector<128x1xf32>
    %c0_28 = arith.constant 0 : index
    %c0_29 = arith.constant 0 : index
    %34 = vector.load %arg13[%c0_28, %c0_29] : memref<1x32xf32, #tpu.memory_space<vmem>>, vector<1x32xf32>
    %35 = vector.broadcast %34 : vector<1x32xf32> to vector<128x32xf32>
    %36 = arith.mulf %28, %35 : vector<128x32xf32>
    %cst_30 = arith.constant dense<0.000000e+00> : vector<128xf32>
    %37 = vector.multi_reduction <add>, %36, %cst_30 [1] : vector<128x32xf32> to vector<128xf32>
    %38 = vector.shape_cast %37 : vector<128xf32> to vector<128x1xf32>
    %39 = arith.addf %33, %38 : vector<128x1xf32>
    %c0_31 = arith.constant 0 : index
    %c0_32 = arith.constant 0 : index
    %40 = vector.load %arg14[%c0_31, %c0_32] : memref<1x1xf32, #tpu.memory_space<vmem>>, vector<1x1xf32>
    %41 = vector.broadcast %40 : vector<1x1xf32> to vector<128x1xf32>
    %42 = arith.addf %39, %41 : vector<128x1xf32>
    %c0_33 = arith.constant 0 : index
    %c0_34 = arith.constant 0 : index
    %43 = vector.load %arg15[%c0_33, %c0_34] : memref<128x1xf32, #tpu.memory_space<vmem>>, vector<128x1xf32>
    tpu.vector_store %arg15[%c0_33, %c0_34], %42 {strides = array<i32>} : memref<128x1xf32, #tpu.memory_space<vmem>>, vector<128x1xf32>,
    return
  }
  func.func @transform_0(%arg0: i32, %arg1: memref<256xi32, #tpu.memory_space<smem>>, %arg2: memref<256xi32, #tpu.memory_space<smem>>) -> (i32, i32) {
    %c0_i32 = arith.constant 0 : i32
    %c0_i32_0 = arith.constant 0 : i32
    %c0_i32_1 = arith.constant 0 : i32
    return %c0_i32, %c0_i32_0 : i32, i32
  }
  func.func @transform_1(%arg0: i32, %arg1: memref<256xi32, #tpu.memory_space<smem>>, %arg2: memref<256xi32, #tpu.memory_space<smem>>) -> (i32, i32) {
    %c0_i32 = arith.constant 0 : i32
    %c0_i32_0 = arith.constant 0 : i32
    %c0_i32_1 = arith.constant 0 : i32
    return %c0_i32, %c0_i32_0 : i32, i32
  }
  func.func @transform_2(%arg0: i32, %arg1: memref<256xi32, #tpu.memory_space<smem>>, %arg2: memref<256xi32, #tpu.memory_space<smem>>) -> (i32, i32) {
    %c0_i32 = arith.constant 0 : i32
    %c0_i32_0 = arith.constant 0 : i32
    %c0_i32_1 = arith.constant 0 : i32
    return %c0_i32, %c0_i32_0 : i32, i32
  }
  func.func @transform_3(%arg0: i32, %arg1: memref<256xi32, #tpu.memory_space<smem>>, %arg2: memref<256xi32, #tpu.memory_space<smem>>) -> (i32, i32) {
    %c0_i32 = arith.constant 0 : i32
    %c0_i32_0 = arith.constant 0 : i32
    %c0_i32_1 = arith.constant 0 : i32
    return %c0_i32, %c0_i32_0 : i32, i32
  }
  func.func @transform_4(%arg0: i32, %arg1: memref<256xi32, #tpu.memory_space<smem>>, %arg2: memref<256xi32, #tpu.memory_space<smem>>) -> (i32, i32) {
    %c0_i32 = arith.constant 0 : i32
    %c0_i32_0 = arith.constant 0 : i32
    %c0_i32_1 = arith.constant 0 : i32
    return %c0_i32, %c0_i32_0 : i32, i32
  }
  func.func @transform_5(%arg0: i32, %arg1: memref<256xi32, #tpu.memory_space<smem>>, %arg2: memref<256xi32, #tpu.memory_space<smem>>) -> (i32, i32) {
    %c0_i32 = arith.constant 0 : i32
    %c0_i32_0 = arith.constant 0 : i32
    %c0_i32_1 = arith.constant 0 : i32
    return %c0_i32, %c0_i32_0 : i32, i32
  }
  func.func @transform_6(%arg0: i32, %arg1: memref<256xi32, #tpu.memory_space<smem>>, %arg2: memref<256xi32, #tpu.memory_space<smem>>) -> (i32, i32) {
    %c0_i32 = arith.constant 0 : i32
    %c0_i32_0 = arith.constant 0 : i32
    %c0_i32_1 = arith.constant 0 : i32
    return %c0_i32, %c0_i32_0 : i32, i32
  }
  func.func @transform_7(%arg0: i32, %arg1: memref<256xi32, #tpu.memory_space<smem>>, %arg2: memref<256xi32, #tpu.memory_space<smem>>) -> (i32, i32) {
    %c0_i32 = arith.constant 0 : i32
    %c0_i32_0 = arith.constant 0 : i32
    %c0_i32_1 = arith.constant 0 : i32
    return %c0_i32, %c0_i32_0 : i32, i32
  }
  func.func @transform_8(%arg0: i32, %arg1: memref<256xi32, #tpu.memory_space<smem>>, %arg2: memref<256xi32, #tpu.memory_space<smem>>) -> (i32, i32) {
    %c0_i32 = arith.constant 0 : i32
    %c0_i32_0 = arith.constant 0 : i32
    %c0_i32_1 = arith.constant 0 : i32
    return %c0_i32, %c0_i32_0 : i32, i32
  }
  func.func @transform_9(%arg0: i32, %arg1: memref<256xi32, #tpu.memory_space<smem>>, %arg2: memref<256xi32, #tpu.memory_space<smem>>) -> (i32, i32) {
    %c0_i32 = arith.constant 0 : i32
    %c0_i32_0 = arith.constant 0 : i32
    %c0_i32_1 = arith.constant 0 : i32
    return %c0_i32, %c0_i32_0 : i32, i32
  }
  func.func @transform_10(%arg0: i32, %arg1: memref<256xi32, #tpu.memory_space<smem>>, %arg2: memref<256xi32, #tpu.memory_space<smem>>) -> (i32, i32) {
    %c0_i32 = arith.constant 0 : i32
    %c0_i32_0 = arith.constant 0 : i32
    %c0_i32_1 = arith.constant 0 : i32
    return %c0_i32, %c0_i32_0 : i32, i32
  }
  func.func @transform_11(%arg0: i32, %arg1: memref<256xi32, #tpu.memory_space<smem>>, %arg2: memref<256xi32, #tpu.memory_space<smem>>) -> (i32, i32) {
    %c0_i32 = arith.constant 0 : i32
    %c0_i32_0 = arith.constant 0 : i32
    %c0_i32_1 = arith.constant 0 : i32
    return %c0_i32, %c0_i32_0 : i32, i32
  }
  func.func @transform_12(%arg0: i32, %arg1: memref<256xi32, #tpu.memory_space<smem>>, %arg2: memref<256xi32, #tpu.memory_space<smem>>) -> (i32, i32) {
    %c0_i32 = arith.constant 0 : i32
    %c0_i32_0 = arith.constant 0 : i32
    return %arg0, %c0_i32 : i32, i32
  }
}

</mosaic_0001>

<bundles_post_ra>
// kernel: tpu_custom_call.1
= control target key start
LH: loop header
LB: loop body
LE: loop exit
PB: predicated region body
PF: predicated region fallthrough
CT: control target
= control target key end

     0   :  { %s3023_s0 = inlined_call_operand.vmem [shape: s32[256], index: 0, kind: input, shape index: {}]   ;;  %s3024_s2 = inlined_call_operand.vmem [shape: f32[600,160], index: 2, kind: input, shape index: {}]   ;;  %s3025_s3 = inlined_call_operand.vmem [shape: f32[900,160], index: 3, kind: input, shape index: {}]   ;;  %s3026_s4 = inlined_call_operand.vmem [shape: f32[160,128], index: 4, kind: input, shape index: {}]   ;;  %s3027_s5 = inlined_call_operand.vmem [shape: f32[160,128], index: 5, kind: input, shape index: {}]   ;;  %s3028_s6 = inlined_call_operand.vmem [shape: f32[1,128], index: 6, kind: input, shape index: {}]   ;;  %s3029_s7 = inlined_call_operand.vmem [shape: f32[128,64], index: 7, kind: input, shape index: {}]   ;;  %s3030_s8 = inlined_call_operand.vmem [shape: f32[1,64], index: 8, kind: input, shape index: {}]   ;;  %s3031_s9 = inlined_call_operand.vmem [shape: f32[64,32], index: 9, kind: input, shape index: {}]   ;;  %s3032_s10 = inlined_call_operand.vmem [shape: f32[1,32], index: 10, kind: input, shape index: {}]   ;;  %s3033_s11 = inlined_call_operand.vmem [shape: f32[1,160], index: 11, kind: input, shape index: {}]   ;;  %s3034_s12 = inlined_call_operand.vmem [shape: f32[1,32], index: 12, kind: input, shape index: {}]   ;;  %s3035_s14 = inlined_call_operand.vmem [shape: f32[256,1], index: 14, kind: output, shape index: {}]   ;;  %s3036_s1 = inlined_call_operand.vmem [shape: s32[256], index: 1, kind: input, shape index: {}]   ;;  %s3037_s13 = inlined_call_operand.<no memory space> [shape: f32[1,1], index: 13, kind: input, shape index: {}]  }
   0x1   :  { %3048 = sst [smem:[#allocation46_spill]] %s3035_s14  ;;  %s19_s15 = sshll.u32 %s3023_s0, 4  ;;  %v27_v0 = vstv %s3037_s13  ;;  %s20_s15 = int_to_ptr.vmem [resolvable:$true] %s19_s15 }
   0x2   :  { %s23_s18 = sshll.u32 %s3036_s1, 4  ;;  %28 = vst [vmem:[#allocation7] sm:$0x1] %v27_v0  ;;  %s2071_s21 = scalar_lea.vmem %s20_s15, 32  ;;  %s24_s18 = int_to_ptr.vmem [resolvable:$true] %s23_s18 }
   0x3   :  { %p2072_p0 = scmp.ne.s32.totalorder %s20_s15, %s2071_s21  ;;  %p2076_p1 = scmp.lt.s32.totalorder %s20_s15, %s20_s15 }
   0x4   :  { %p2077_p2 = scmp.lt.s32.totalorder %s2071_s21, %s2071_s21 }
   0x6   :  { %p2078_p3 = por %p2077_p2, %p2076_p1 }
   0x8   :  { %p2079_p4 = pnand %p2078_p3, %p2072_p0 }
   0xa   :  { %2082 = shalt.err (!%p2079_p4)  }
   0xb   :  { %s2113_s22 = smov [#allocation5]   ;;  %s2083_s0 = scalar_lea.vmem %s24_s18, 32 }
   0xc   :  { %22 = dma.vmem_to_smem %s20_s15, 32, %s2113_s22, [#allocation4] }
   0xd   :  { %p2084_p5 = scmp.ne.s32.totalorder %s24_s18, %s2083_s0  ;;  %p2088_p6 = scmp.lt.s32.totalorder %s24_s18, %s24_s18 }
   0xe   :  { %p2089_p7 = scmp.lt.s32.totalorder %s2083_s0, %s2083_s0 }
  0x10   :  { %p2090_p8 = por %p2089_p7, %p2088_p6 }
  0x12   :  { %p2091_p9 = pnand %p2090_p8, %p2084_p5 }
  0x14   :  { %2094 = shalt.err (!%p2091_p9)  }
  0x15   :  { %s2114_s1 = smov [#allocation6]  }
  0x16   :  { %26 = dma.vmem_to_smem %s24_s18, 32, %s2114_s1, [#allocation4] }
  0x17   :  { %2103 = dma.done.wait [#allocation4], 64 }
  0x18   :  { %2104 = vsyncadd [#allocation4], 4294967232 }
  0x19   :  { %30 = sfence }
  0x1a   :  { %s2200_s13 = smov 0  }
  0x1b LB: > { %3049 = sst [smem:[#allocation9_spill]] %s2107_s13  ;;  %s1721_s23 = sadd.s32 4294967295, %s2107_s13   ;;  %s2107_s13 = sphi %s2200_s13, %s36_s13  }
  0x1c   : > { %p1724_p10 = scmp.ge.s32.totalorder %s2107_s13, 1  ;;  %p366_p11 = scmp.lt.s32.totalorder %s2107_s13, 3 }
  0x1e   : > { %p367_p12 = pnand %p1724_p10, %p366_p11 }
  0x20   : > { %370 = sbr.rel (%p367_p12) target bundleno = 969 (0x3c9), region = 68 }
  0x27   : > { %s1725_s24 = sshll.u32 %s1721_s23, 4  ;;  %s2208_s25 = sshll.u32 %s1721_s23, 7 }
  0x28   : > { %3050 = sst [smem:[#allocation10_spill]] %s2208_s25  ;;  %p404_p13 = scmp.lt.s32.totalorder %s1725_s24, 31 }
  0x29   : > { %s3051_s14 = sld [smem:[#allocation46_spill]]  ;;  %s2215_s30 = smov 0  }
  0x2a   : > { %s3127_s24 = smov (!%p404_p13, %s1725_s24), 31 }
  0x2b   : > { %s1726_s26 = sshll.u32 %s3127_s24, 3 }
  0x2f   : > { %s2213_s29 = scalar_lea.vmem %s3051_s14, %s1726_s26 }
  0x30   : > { %3052 = sst [smem:[#allocation11_spill]] %s2213_s29 }
  0x31 LB: >> { %s3053_s25 = sld [smem:[#allocation10_spill]]  ;;  %s432_s16 = sshra.s32 %s2111_s30, 3  ;;  %v3040_v1 = vlaneseq  ;;  %s2111_s30 = sphi %s2215_s30, %s415_s30  }
  0x32   : >> { %s435_s18 = sand.u32 7, %s2111_s30  ;;  %s1790_s19 = sshll.u32 %s432_s16, 4 }
  0x33   : >> { %s438_s21 = sadd.s32 %s1790_s19, %s435_s18  ;;  %vm430_vm0 = vcmp.lt.s32.totalorder %v3040_v1, 160 }
  0x34   : >> { %s439_s29 = scalar_lea.vmem [#allocation2], %s438_s21 }
  0x37   : >> { %s416_s15 = sadd.s32 %s2111_s30, %s3053_s25  ;;  %s415_s30 = sadd.s32 1, %s2111_s30  }
  0x38   : >> { %s417_s17 = sld [smem:[#allocation5 + %s416_s15]]  ;;  %p412_p0 = scmp.ge.s32.totalorder %s415_s30, 128  }
  0x39   : >> { %s418_s20 = sld [smem:[#allocation6 + %s416_s15]]  ;;  %v570_v4 = vld [vmem:[%s3027_s5] sm:$0xff] (%p412_p0)  ;;  %v571_v5 = vld [vmem:[%s3027_s5 + $0x8] sm:$0xff] (%p412_p0)  ;;  %v3041_v7 = vmov (%p412_p0), 0.0|0.0   ;;  %v572_v10 = vld [vmem:[%s3027_s5 + $0x10] sm:$0xff] (%p412_p0)  ;;  %vm590_vm1 = vcmask (%p412_p0), 261120  }
  0x3a   : > { %v550_v6 = vld [vmem:[%s3026_s4] sm:$0xff] (%p412_p0)  ;;  %1944 = vmatprep.subr.bf16.mxu0 (%p412_p0), %v3041_v7  ;;  %1974 = vmatprep.subr.bf16.mxu1 (%p412_p0), %v3041_v7  ;;  %v1945_v8 = vpack.c.bf16 (%p412_p0), %v571_v5, %v570_v4  ;;  %v551_v9 = vld [vmem:[%s3026_s4 + $0x8] sm:$0xff] (%p412_p0)  ;;  %v573_v11 = vld [vmem:[%s3027_s5 + $0x18] sm:$0xff] (%p412_p0)  ;;  %vm1215_vm2 = vcmask (%p412_p0), 523264   ;;  %vm1643_vm3 = vcmask (%p412_p0), 7168  }
  0x3b   : > { %v1975_v12 = vpack.c.bf16 (%p412_p0), %v551_v9, %v550_v6  ;;  %v552_v13 = vld [vmem:[%s3026_s4 + $0x10] sm:$0xff] (%p412_p0)  ;;  %v553_v14 = vld [vmem:[%s3026_s4 + $0x18] sm:$0xff] (%p412_p0)  ;;  %v1948_v15 = vpack.c.bf16 (%p412_p0), %v573_v11, %v572_v10  ;;  %v574_v17 = vld [vmem:[%s3027_s5 + $0x20] sm:$0xff] (%p412_p0) }
  0x3c   : > { %1946 = vmatpush1.bf16.msra.mxu0 (%p412_p0), %v1945_v8  ;;  %v1978_v16 = vpack.c.bf16 (%p412_p0), %v553_v14, %v552_v13  ;;  %v575_v18 = vld [vmem:[%s3027_s5 + $0x28] sm:$0xff] (%p412_p0)  ;;  %v554_v19 = vld [vmem:[%s3026_s4 + $0x20] sm:$0xff] (%p412_p0)  ;;  %v576_v23 = vld [vmem:[%s3027_s5 + $0x30] sm:$0xff] (%p412_p0) }
  0x3d   : > { %1976 = vmatpush1.bf16.msra.mxu1 (%p412_p0), %v1975_v12  ;;  %1947 = vmatprep.subr.bf16.mxu0 (%p412_p0), %v3041_v7  ;;  %v555_v20 = vld [vmem:[%s3026_s4 + $0x28] sm:$0xff] (%p412_p0)  ;;  %v1951_v21 = vpack.c.bf16 (%p412_p0), %v575_v18, %v574_v17  ;;  %v577_v24 = vld [vmem:[%s3027_s5 + $0x38] sm:$0xff] (%p412_p0)  ;;  %v556_v25 = vld [vmem:[%s3026_s4 + $0x30] sm:$0xff] (%p412_p0) }
  0x3e   : >> { %s419_s22 = sshra.s32 %s417_s17, 3  ;;  %s422_s0 = sand.u32 7, %s417_s17  ;;  %1977 = vmatprep.subr.bf16.mxu1 (%p412_p0), %v3041_v7  ;;  %v1981_v22 = vpack.c.bf16 (%p412_p0), %v555_v20, %v554_v19  ;;  %v557_v26 = vld [vmem:[%s3026_s4 + $0x38] sm:$0xff] (%p412_p0)  ;;  %v1954_v27 = vpack.c.bf16 (%p412_p0), %v577_v24, %v576_v23  ;;  %v578_v29 = vld [vmem:[%s3027_s5 + $0x40] sm:$0xff] (%p412_p0)  ;;  %v579_v30 = vld [vmem:[%s3027_s5 + $0x48] sm:$0xff] (%p412_p0) }
  0x3f   : >> { %s1789_s1 = sshll.u32 %s419_s22, 4  ;;  %s442_s23 = sshra.s32 %s418_s20, 3  ;;  %v1984_v28 = vpack.c.bf16 (%p412_p0), %v557_v26, %v556_v25  ;;  %v558_v31 = vld [vmem:[%s3026_s4 + $0x40] sm:$0xff] (%p412_p0)  ;;  %v559_v32 = vld [vmem:[%s3026_s4 + $0x48] sm:$0xff] (%p412_p0)  ;;  %v2299_v35 = vld [vmem:[%s3027_s5 + $0x50] sm:$0xff] (%p412_p0)  ;;  %v1957_v41 = vpack.c.bf16 (%p412_p0), %v579_v30, %v578_v29 }
  0x40   : >> { %s425_s24 = sadd.s32 %s1789_s1, %s422_s0  ;;  %s445_s26 = sand.u32 7, %s418_s20  ;;  %1949 = vmatpush1.bf16.msra.mxu0 (%p412_p0), %v1948_v15  ;;  %v2304_v36 = vld [vmem:[%s3027_s5 + $0x58] sm:$0xff] (%p412_p0)  ;;  %v560_v42 = vld [vmem:[%s3026_s4 + $0x50] sm:$0xff] (%p412_p0)  ;;  %v1987_v48 = vpack.c.bf16 (%p412_p0), %v559_v32, %v558_v31  ;;  %v2361_v58 = vld [vmem:[%s3027_s5 + $0x60] sm:$0xff] (%p412_p0) }
  0x41   : >> { %s426_s14 = scalar_lea.vmem %s3024_s2, %s425_s24  ;;  %s1791_s25 = sshll.u32 %s442_s23, 4  ;;  %1979 = vmatpush1.bf16.msra.mxu1 (%p412_p0), %v1978_v16  ;;  %1950 = vmatprep.subr.bf16.mxu0 (%p412_p0), %v3041_v7  ;;  %v561_v43 = vld [vmem:[%s3026_s4 + $0x58] sm:$0xff] (%p412_p0)  ;;  %v583_v59 = vld [vmem:[%s3027_s5 + $0x68] sm:$0xff] (%p412_p0)  ;;  %v584_v20 = vld [vmem:[%s3027_s5 + $0x70] sm:$0xff] (%p412_p0) }
  0x42   : >> { %v427_v2 = vld [vmem:[%s426_s14] ss:$8 sm:$0x3]  ;;  %s448_s13 = sadd.s32 %s1791_s25, %s445_s26  ;;  %s451_s17 = scalar_lea.vmem [#allocation3], %s438_s21  ;;  %1980 = vmatprep.subr.bf16.mxu1 (%p412_p0), %v3041_v7  ;;  %v1990_v10 = vpack.c.bf16 (%p412_p0), %v561_v43, %v560_v42  ;;  %v565_v29 = vld [vmem:[%s3026_s4 + $0x78] sm:$0xff] (%p412_p0) }
  0x43   : >> { %440 = vst.msk [vmem:[%s439_s29] ss:$8 sm:$0x3] %vm430_vm0, %v427_v2  ;;  %s449_s18 = scalar_lea.vmem %s3025_s3, %s448_s13  ;;  %414 = sbr.rel (!%p412_p0) target bundleno = 49 (0x31), region = 106  ;;  %v1960_v2 = vpack.c.bf16 (%p412_p0), %v2304_v36, %v2299_v35  ;;  %v563_v4 = vld [vmem:[%s3026_s4 + $0x68] sm:$0xff] (%p412_p0) }
  0x44   : >> { %v450_v3 = vld [vmem:[%s449_s18] ss:$8 sm:$0x3]  ;;  %1952 = vmatpush1.bf16.msra.mxu0 (%p412_p0), %v1951_v21  ;;  %v585_v21 = vld [vmem:[%s3027_s5 + $0x78] sm:$0xff] (%p412_p0)  ;;  %s3124_s18 = sld [smem:[#allocation11_spill]] (%p412_p0) }
  0x45   : >> { %452 = vst.msk [vmem:[%s451_s17] ss:$8 sm:$0x3] %vm430_vm0, %v450_v3  ;;  %1982 = vmatpush1.bf16.msra.mxu1 (%p412_p0), %v1981_v22  ;;  %1953 = vmatprep.subr.bf16.mxu0 (%p412_p0), %v3041_v7  ;;  %v562_v3 = vld [vmem:[%s3026_s4 + $0x60] sm:$0xff] (%p412_p0) }
  0x46   : > { %1983 = vmatprep.subr.bf16.mxu1 (%p412_p0), %v3041_v7 }
  0x48   : > { %1955 = vmatpush1.bf16.msra.mxu0 (%p412_p0), %v1954_v27  ;;  %v1963_v27 = vpack.c.bf16 (%p412_p0), %v583_v59, %v2361_v58 }
  0x49   : > { %1985 = vmatpush1.bf16.msra.mxu1 (%p412_p0), %v1984_v28  ;;  %1956 = vmatprep.subr.bf16.mxu0 (%p412_p0), %v3041_v7  ;;  %v564_v28 = vld [vmem:[%s3026_s4 + $0x70] sm:$0xff] (%p412_p0) }
  0x4a   : > { %v455_v34 = vld [vmem:[#allocation2 + $0x8] sm:$0xff]  ;;  %v2312_v39 = vld [vmem:[#allocation2] sm:$0xff]  ;;  %v2326_v45 = vld [vmem:[#allocation2 + $0x18] sm:$0xff]  ;;  %1986 = vmatprep.subr.bf16.mxu1 %v3041_v7 }
  0x4b   : > { %1750 = vmatprep.mubr.msk.f32.mxu1 %vm590_vm1, %v455_v34  ;;  %v2330_v47 = vld [vmem:[#allocation2 + $0x10] sm:$0xff]  ;;  %v2343_v52 = vld [vmem:[#allocation2 + $0x28] sm:$0xff]  ;;  %v2352_v55 = vld [vmem:[#allocation2 + $0x20] sm:$0xff] }
  0x4c   : > { %v487_v33 = vld [vmem:[#allocation3 + $0x8] sm:$0xff]  ;;  %v2310_v38 = vld [vmem:[#allocation3] sm:$0xff]  ;;  %v2314_v40 = vld [vmem:[#allocation3 + $0x18] sm:$0xff]  ;;  %1958 = vmatpush1.bf16.msra.mxu0 %v1957_v41 }
  0x4d   : > { %1734 = vmatprep.mubr.msk.f32.mxu0 %vm590_vm1, %v487_v33  ;;  %v2307_v37 = vmul.f32 %v487_v33, %v455_v34  ;;  %v2324_v44 = vmul.f32 %v2310_v38, %v2312_v39  ;;  %v2328_v46 = vld [vmem:[#allocation3 + $0x10] sm:$0xff]  ;;  %v2335_v49 = vmul.f32 %v2314_v40, %v2326_v45  ;;  %v2341_v51 = vld [vmem:[#allocation3 + $0x28] sm:$0xff]  ;;  %v2345_v53 = vld [vmem:[#allocation3 + $0x20] sm:$0xff]  ;;  %1988 = vmatpush1.bf16.msra.mxu1 %v1987_v48 }
  0x4e   : > { %v2339_v50 = vmul.f32 %v2328_v46, %v2330_v47  ;;  %v2350_v54 = vmul.f32 %v2341_v51, %v2343_v52  ;;  %v2354_v56 = vld [vmem:[#allocation3 + $0x38] sm:$0xff]  ;;  %v2368_v60 = vmul.f32 %v2345_v53, %v2352_v55  ;;  %v2374_v62 = vld [vmem:[#allocation3 + $0x30] sm:$0xff]  ;;  %v2378_v0 = vld [vmem:[#allocation3 + $0x48] sm:$0xff]  ;;  %1959 = vmatprep.subr.bf16.mxu0 %v3041_v7  ;;  %1989 = vmatprep.subr.bf16.mxu1 %v3041_v7 }
  0x4f   : > { %3054 = vst [vmem:[#allocation12_spill] sm:$0xff] %v2307_v37  ;;  %3055 = vst [vmem:[#allocation13_spill] sm:$0xff] %v2324_v44  ;;  %v2356_v57 = vld [vmem:[#allocation2 + $0x38] sm:$0xff]  ;;  %v2376_v63 = vld [vmem:[#allocation2 + $0x30] sm:$0xff]  ;;  %v1993_v34 = vpack.c.bf16 %v563_v4, %v562_v3 }
  0x50   : > { %3056 = vst [vmem:[#allocation14_spill] sm:$0xff] %v2335_v49  ;;  %3057 = vst [vmem:[#allocation15_spill] sm:$0xff] %v2339_v50  ;;  %v2372_v61 = vmul.f32 %v2354_v56, %v2356_v57  ;;  %v2390_v5 = vmul.f32 %v2374_v62, %v2376_v63  ;;  %v2392_v6 = vld [vmem:[#allocation2 + $0x48] sm:$0xff]  ;;  %v2394_v8 = vld [vmem:[#allocation3 + $0x40] sm:$0xff]  ;;  %1961 = vmatpush1.bf16.msra.mxu0 %v1960_v2 }
  0x51   : > { %3058 = vst [vmem:[#allocation16_spill] sm:$0xff] %v2350_v54  ;;  %3059 = vst [vmem:[#allocation17_spill] sm:$0xff] %v2368_v60  ;;  %v2396_v9 = vld [vmem:[#allocation2 + $0x40] sm:$0xff]  ;;  %v2401_v11 = vmul.f32 %v2378_v0, %v2392_v6  ;;  %v2407_v13 = vld [vmem:[#allocation3 + $0x58] sm:$0xff]  ;;  %1991 = vmatpush1.bf16.msra.mxu1 %v1990_v10  ;;  %1962 = vmatprep.subr.bf16.mxu0 %v3041_v7 }
  0x52   : > { %3060 = vst [vmem:[#allocation18_spill] sm:$0xff] %v2372_v61  ;;  %3061 = vst [vmem:[#allocation19_spill] sm:$0xff] %v2390_v5  ;;  %v2405_v12 = vmul.f32 %v2394_v8, %v2396_v9  ;;  %v2409_v14 = vld [vmem:[#allocation2 + $0x58] sm:$0xff]  ;;  %v2411_v15 = vld [vmem:[#allocation3 + $0x50] sm:$0xff]  ;;  %1992 = vmatprep.subr.bf16.mxu1 %v3041_v7 }
  0x53   : > { %3062 = vst [vmem:[#allocation20_spill] sm:$0xff] %v2401_v11  ;;  %v2416_v16 = vmul.f32 %v2407_v13, %v2409_v14  ;;  %v2418_v17 = vld [vmem:[#allocation2 + $0x50] sm:$0xff]  ;;  %v2420_v18 = vld [vmem:[#allocation3 + $0x68] sm:$0xff]  ;;  %v2438_v24 = vld [vmem:[#allocation3 + $0x60] sm:$0xff] }
  0x54   : > { %3063 = vst [vmem:[#allocation21_spill] sm:$0xff] %v2405_v12  ;;  %v2422_v19 = vld [vmem:[#allocation2 + $0x68] sm:$0xff]  ;;  %v2432_v22 = vmul.f32 %v2411_v15, %v2418_v17  ;;  %v2440_v25 = vld [vmem:[#allocation2 + $0x60] sm:$0xff]  ;;  %v2442_v26 = vld [vmem:[#allocation3 + $0x78] sm:$0xff]  ;;  %1964 = vmatpush1.bf16.msra.mxu0 %v1963_v27 }
  0x55   : > { %3064 = vst [vmem:[#allocation22_spill] sm:$0xff] %v2416_v16  ;;  %v2436_v23 = vmul.f32 %v2420_v18, %v2422_v19  ;;  %v2453_v30 = vmul.f32 %v2438_v24, %v2440_v25  ;;  %v2455_v31 = vld [vmem:[#allocation2 + $0x78] sm:$0xff]  ;;  %v2457_v32 = vld [vmem:[#allocation3 + $0x70] sm:$0xff]  ;;  %v2470_v41 = vld [vmem:[#allocation3 + $0x88] sm:$0xff]  ;;  %1994 = vmatpush1.bf16.msra.mxu1 %v1993_v34 }
  0x56   : > { %3065 = vst [vmem:[#allocation23_spill] sm:$0xff] %v2432_v22  ;;  %v2459_v33 = vld [vmem:[#allocation2 + $0x70] sm:$0xff]  ;;  %v2464_v35 = vmul.f32 %v2442_v26, %v2455_v31  ;;  %v2472_v42 = vld [vmem:[#allocation2 + $0x88] sm:$0xff]  ;;  %v2474_v43 = vld [vmem:[#allocation3 + $0x80] sm:$0xff] }
  0x57   : > { %3066 = vst [vmem:[#allocation24_spill] sm:$0xff] %v2436_v23  ;;  %3067 = vst [vmem:[#allocation25_spill] sm:$0xff] %v2453_v30  ;;  %v2468_v36 = vmul.f32 %v2457_v32, %v2459_v33  ;;  %v2479_v48 = vmul.f32 %v2470_v41, %v2472_v42  ;;  %v2481_v58 = vld [vmem:[#allocation2 + $0x80] sm:$0xff]  ;;  %v2483_v59 = vld [vmem:[#allocation3 + $0x98] sm:$0xff]  ;;  %v1966_v30 = vpack.c.bf16 %v585_v21, %v584_v20  ;;  %v3074_v20 = vmov 0.0|0.0  }
  0x58   : > { %3068 = vst [vmem:[#allocation26_spill] sm:$0xff] %v2464_v35  ;;  %v2485_v2 = vld [vmem:[#allocation2 + $0x98] sm:$0xff]  ;;  %v586_v3 = vld [vmem:[%s3027_s5 + $0x80] sm:$0xff]  ;;  %v587_v4 = vld [vmem:[%s3027_s5 + $0x88] sm:$0xff]  ;;  %v2495_v10 = vmul.f32 %v2474_v43, %v2481_v58  ;;  %1965 = vmatprep.subr.bf16.mxu0 %v3074_v20  ;;  %v1996_v21 = vpack.c.bf16 %v565_v29, %v564_v28  ;;  %1995 = vmatprep.subr.bf16.mxu1 %v3074_v20 }
  0x59   : > { %3069 = vst [vmem:[#allocation27_spill] sm:$0xff] %v2468_v36  ;;  %3070 = vst [vmem:[#allocation28_spill] sm:$0xff] %v2479_v48  ;;  %v2499_v1 = vmul.f32 %v2483_v59, %v2485_v2  ;;  %v2501_v7 = vld [vmem:[#allocation3 + $0x90] sm:$0xff]  ;;  %v2505_v23 = vld [vmem:[#allocation3 + $0xa8] sm:$0xff]  ;;  %1967 = vmatpush1.bf16.msra.mxu0 %v1966_v30  ;;  %v1969_v44 = vpack.c.bf16 %v587_v4, %v586_v3 }
  0x5a   : > { %3071 = vst [vmem:[#allocation29_spill] sm:$0xff] %v2495_v10  ;;  %v2503_v48 = vld [vmem:[#allocation2 + $0x90] sm:$0xff]  ;;  %v566_v35 = vld [vmem:[%s3026_s4 + $0x80] sm:$0xff]  ;;  %v567_v10 = vld [vmem:[%s3026_s4 + $0x88] sm:$0xff]  ;;  %1997 = vmatpush1.bf16.msra.mxu1 %v1996_v21  ;;  %1968 = vmatprep.subr.bf16.mxu0 %v3074_v20 }
  0x5b   : > { %3072 = vst [vmem:[#allocation30_spill] sm:$0xff] %v2499_v1  ;;  %v2515_v36 = vmul.f32 %v2501_v7, %v2503_v48  ;;  %v2517_v1 = vld [vmem:[#allocation2 + $0xa8] sm:$0xff]  ;;  %v2519_v11 = vld [vmem:[#allocation3 + $0xa0] sm:$0xff]  ;;  %v2532_v22 = vld [vmem:[#allocation3 + $0xb8] sm:$0xff]  ;;  %1998 = vmatprep.subr.bf16.mxu1 %v3074_v20 }
  0x5c   : > { %v2521_v12 = vld [vmem:[#allocation2 + $0xa0] sm:$0xff]  ;;  %v2526_v27 = vmul.f32 %v2505_v23, %v2517_v1  ;;  %v2536_v49 = vld [vmem:[#allocation3 + $0xb0] sm:$0xff]  ;;  %v2545_v29 = vld [vmem:[#allocation3 + $0xc8] sm:$0xff] }
  0x5d   : > { %3073 = vst [vmem:[#allocation31_spill] sm:$0xff] %v2515_v36  ;;  %v2530_v16 = vmul.f32 %v2519_v11, %v2521_v12  ;;  %v2534_v36 = vld [vmem:[#allocation2 + $0xb8] sm:$0xff]  ;;  %v2543_v28 = vld [vmem:[#allocation2 + $0xb0] sm:$0xff]  ;;  %v2560_v5 = vld [vmem:[#allocation3 + $0xc0] sm:$0xff]  ;;  %1970 = vmatpush1.bf16.msra.mxu0 %v1969_v44 }
  0x5e   : > { %3075 = vst [vmem:[#allocation32_spill] sm:$0xff] %v2526_v27  ;;  %v2541_v34 = vmul.f32 %v2532_v22, %v2534_v36  ;;  %3078 = vst [vmem:[#allocation35_spill] sm:$0xff] %v2543_v28  ;;  %v2547_v27 = vld [vmem:[#allocation2 + $0xc8] sm:$0xff]  ;;  %v2554_v50 = vmul.f32 %v2536_v49, %v2543_v28  ;;  %v2564_v37 = vld [vmem:[#allocation3 + $0xd8] sm:$0xff]  ;;  %1971 = vmatprep.subr.bf16.mxu0 %v3074_v20 }
  0x5f   : > { %3076 = vst [vmem:[#allocation33_spill] sm:$0xff] %v2530_v16  ;;  %3079 = vst [vmem:[#allocation36_spill] sm:$0xff] %v2547_v27  ;;  %v588_v16 = vld [vmem:[%s3027_s5 + $0x90] sm:$0xff]  ;;  %v2558_v61 = vmul.f32 %v2545_v29, %v2547_v27  ;;  %v2570_v60 = vld [vmem:[#allocation2 + $0xd8] sm:$0xff] }
  0x60   : > { %3077 = vst [vmem:[#allocation34_spill] sm:$0xff] %v2541_v34  ;;  %3080 = vst [vmem:[#allocation37_spill] sm:$0xff] %v2554_v50  ;;  %v2562_v34 = vld [vmem:[#allocation2 + $0xc0] sm:$0xff]  ;;  %v2572_v28 = vld [vmem:[#allocation3 + $0xd0] sm:$0xff]  ;;  %v2582_v30 = vmul.f32 %v2564_v37, %v2570_v60 }
  0x61   : > { %3081 = vst [vmem:[#allocation38_spill] sm:$0xff] %v2558_v61  ;;  %v2568_v54 = vmul.f32 %v2560_v5, %v2562_v34  ;;  %3083 = vst [vmem:[#allocation40_spill] sm:$0xff] %v2570_v60  ;;  %v2574_v50 = vld [vmem:[#allocation2 + $0xd0] sm:$0xff]  ;;  %v1999_v61 = vpack.c.bf16 %v567_v10, %v566_v35  ;;  %v589_v27 = vld [vmem:[%s3027_s5 + $0x98] sm:$0xff] }
  0x62   : > { %3084 = vst [vmem:[#allocation41_spill] sm:$0xff] %v2572_v28  ;;  %3085 = vst [vmem:[#allocation42_spill] sm:$0xff] %v2574_v50  ;;  %v2586_v3 = vmul.f32 %v2572_v28, %v2574_v50  ;;  %v2588_v4 = vld [vmem:[#allocation3 + $0xe8] sm:$0xff]  ;;  %v568_v35 = vld [vmem:[%s3026_s4 + $0x90] sm:$0xff] }
  0x63   : > { %3082 = vst [vmem:[#allocation39_spill] sm:$0xff] %v2568_v54  ;;  %3086 = vst [vmem:[#allocation43_spill] sm:$0xff] %v2582_v30  ;;  %v2590_v54 = vld [vmem:[#allocation2 + $0xe8] sm:$0xff]  ;;  %v569_v10 = vld [vmem:[%s3026_s4 + $0x98] sm:$0xff]  ;;  %2000 = vmatpush1.bf16.msra.mxu1 %v1999_v61 }
  0x64   : > { %3087 = vst [vmem:[#allocation44_spill] sm:$0xff] %v2586_v3  ;;  %v2601_v21 = vmul.f32 %v2588_v4, %v2590_v54  ;;  %v1016_v30 = vld [vmem:[%s3029_s7] sm:$0xff]  ;;  %v1972_v3 = vpack.c.bf16 %v589_v27, %v588_v16  ;;  %v1017_v50 = vld [vmem:[%s3029_s7 + $0x8] sm:$0xff]  ;;  %v2002_v28 = vpack.c.bf16 %v569_v10, %v568_v35  ;;  %2001 = vmatprep.subr.bf16.mxu1 %v3074_v20  ;;  %v1019_v44 = vld [vmem:[%s3029_s7 + $0x18] sm:$0xff] }
  0x65   : > { %v2004_v60 = vpack.c.bf16 %v1017_v50, %v1016_v30  ;;  %v1020_v50 = vld [vmem:[%s3029_s7 + $0x20] sm:$0xff]  ;;  %v1021_v61 = vld [vmem:[%s3029_s7 + $0x28] sm:$0xff]  ;;  %v1023_v27 = vld [vmem:[%s3029_s7 + $0x38] sm:$0xff] }
  0x66   : > { %3088 = vst [vmem:[#allocation45_spill] sm:$0xff] %v2601_v21  ;;  %v1018_v21 = vld [vmem:[%s3029_s7 + $0x10] sm:$0xff]  ;;  %1973 = vmatpush1.bf16.msra.mxu0 %v1972_v3  ;;  %v2012_v20 = vpack.c.bf16 %v1021_v61, %v1020_v50 }
  0x67   : > { %2003 = vmatpush1.bf16.msra.mxu1 %v2002_v28  ;;  %2005 = vmatprep.subr.bf16.mxu0 %v2004_v60  ;;  %v2008_v16 = vpack.c.bf16 %v1019_v44, %v1018_v21 }
  0x69   : > { %704 = vmatmul.mubr.f32.vlgmr.msra.gmra.mrb[0].mxu0 %v2310_v38  ;;  %v1022_v38 = vld [vmem:[%s3029_s7 + $0x30] sm:$0xff] }
  0x6a   : > { %897 = vmatmul.mubr.f32.vlgmr.msra.gmra.mrb[0].mxu1 %v2312_v39  ;;  %1735 = vmatprep.mubr.msk.f32.mxu0 %vm590_vm1, %v2314_v40  ;;  %v2016_v39 = vpack.c.bf16 %v1023_v27, %v1022_v38  ;;  %v1024_v40 = vld [vmem:[%s3029_s7 + $0x40] sm:$0xff] }
  0x6b   : > { %1751 = vmatprep.mubr.msk.f32.mxu1 %vm590_vm1, %v2326_v45  ;;  %2007 = vmatpush3.bf16.msra.mxu0 %v2004_v60  ;;  %v1025_v45 = vld [vmem:[%s3029_s7 + $0x48] sm:$0xff]  ;;  %v2729_v60 = vld [vmem:[#allocation3 + $0xf8] sm:$0xff] }
  0x6c   : > { %2009 = vmatprep.subr.bf16.mxu0 %v2008_v16 }
  0x6d   : > { %709 = vmatmul.mubr.f32.gmra.mrb[2].mxu0 %v2328_v46  ;;  %v2020_v46 = vpack.c.bf16 %v1025_v45, %v1024_v40 }
  0x6e   : > { %902 = vmatmul.mubr.f32.gmra.mrb[2].mxu1 %v2330_v47  ;;  %1736 = vmatprep.mubr.msk.f32.mxu0 %vm590_vm1, %v2341_v51  ;;  %v1026_v47 = vld [vmem:[%s3029_s7 + $0x50] sm:$0xff]  ;;  %v1027_v51 = vld [vmem:[%s3029_s7 + $0x58] sm:$0xff] }
  0x6f   : > { %1752 = vmatprep.mubr.msk.f32.mxu1 %vm590_vm1, %v2343_v52  ;;  %2011 = vmatpush3.bf16.msra.mxu0 %v2008_v16  ;;  %v2024_v52 = vpack.c.bf16 %v1027_v51, %v1026_v47 }
  0x70   : > { %2013 = vmatprep.subr.bf16.mxu0 %v2012_v20 }
  0x71   : > { %714 = vmatmul.mubr.f32.gmra.mrb[4].mxu0 %v2345_v53  ;;  %v3090_v53 = vld [vmem:[#allocation36_spill] sm:$0xff] }
  0x72   : > { %907 = vmatmul.mubr.f32.gmra.mrb[4].mxu1 %v2352_v55  ;;  %1737 = vmatprep.mubr.msk.f32.mxu0 %vm590_vm1, %v2354_v56  ;;  %v3092_v55 = vld [vmem:[#allocation41_spill] sm:$0xff]  ;;  %v2723_v56 = vld [vmem:[#allocation3 + $0xe0] sm:$0xff] }
  0x73   : > { %1753 = vmatprep.mubr.msk.f32.mxu1 %vm590_vm1, %v2356_v57  ;;  %2015 = vmatpush3.bf16.msra.mxu0 %v2012_v20  ;;  %v2727_v57 = vld [vmem:[#allocation2 + $0xe0] sm:$0xff] }
  0x74   : > { %2017 = vmatprep.subr.bf16.mxu0 %v2016_v39 }
  0x75   : > { %719 = vmatmul.mubr.f32.gmra.mrb[6].mxu0 %v2374_v62  ;;  %v2737_v62 = vld [vmem:[#allocation3 + $0xf0] sm:$0xff] }
  0x76   : > { %912 = vmatmul.mubr.f32.gmra.mrb[6].mxu1 %v2376_v63  ;;  %1738 = vmatprep.mubr.msk.f32.mxu0 %vm590_vm1, %v2378_v0  ;;  %v2741_v63 = vld [vmem:[#allocation2 + $0xf0] sm:$0xff]  ;;  %v1029_v0 = vld [vmem:[%s3029_s7 + $0x68] sm:$0xff] }
  0x77   : > { %1754 = vmatprep.mubr.msk.f32.mxu1 %vm590_vm1, %v2392_v6  ;;  %2019 = vmatpush3.bf16.msra.mxu0 %v2016_v39  ;;  %v1030_v6 = vld [vmem:[%s3029_s7 + $0x70] sm:$0xff] }
  0x78   : > { %2021 = vmatprep.subr.bf16.mxu0 %v2020_v46 }
  0x79   : > { %724 = vmatmul.mubr.f32.gmra.mrb[8].mxu0 %v2394_v8  ;;  %v1031_v8 = vld [vmem:[%s3029_s7 + $0x78] sm:$0xff] }
  0x7a   : > { %917 = vmatmul.mubr.f32.gmra.mrb[8].mxu1 %v2396_v9  ;;  %1739 = vmatprep.mubr.msk.f32.mxu0 %vm590_vm1, %v2407_v13  ;;  %v2032_v9 = vpack.c.bf16 %v1031_v8, %v1030_v6  ;;  %v1202_v13 = vld [vmem:[%s3031_s9 + $0x10] sm:$0xff] }
  0x7b   : > { %1755 = vmatprep.mubr.msk.f32.mxu1 %vm590_vm1, %v2409_v14  ;;  %2023 = vmatpush3.bf16.msra.mxu0 %v2020_v46 }
  0x7c   : > { %2025 = vmatprep.subr.bf16.mxu0 %v2024_v52 }
  0x7d   : > { %729 = vmatmul.mubr.f32.gmra.mrb[10].mxu0 %v2411_v15  ;;  %v1203_v15 = vld [vmem:[%s3031_s9 + $0x18] sm:$0xff] }
  0x7e   : > { %922 = vmatmul.mubr.f32.gmra.mrb[10].mxu1 %v2418_v17  ;;  %1740 = vmatprep.mubr.msk.f32.mxu0 %vm590_vm1, %v2420_v18  ;;  %v2040_v17 = vpack.c.bf16 %v1203_v15, %v1202_v13  ;;  %v1204_v18 = vld [vmem:[%s3031_s9 + $0x20] sm:$0xff] }
  0x7f   : > { %1756 = vmatprep.mubr.msk.f32.mxu1 %vm590_vm1, %v2422_v19  ;;  %2027 = vmatpush3.bf16.msra.mxu0 %v2024_v52  ;;  %v1205_v19 = vld [vmem:[%s3031_s9 + $0x28] sm:$0xff] }
  0x81   : > { %734 = vmatmul.mubr.f32.gmra.mrb[12].mxu0 %v2438_v24 }
  0x82   : > { %927 = vmatmul.mubr.f32.gmra.mrb[12].mxu1 %v2440_v25  ;;  %1741 = vmatprep.mubr.msk.f32.mxu0 %vm590_vm1, %v2442_v26  ;;  %v2778_v25 = vld [vmem:[%s3028_s6] ss:$0 sm:$0xff] }
  0x83   : > { %1757 = vmatprep.mubr.msk.f32.mxu1 %vm590_vm1, %v2455_v31 }
  0x85   : > { %739 = vmatmul.mubr.f32.gmra.mrb[14].mxu0 %v2457_v32 }
  0x86   : > { %932 = vmatmul.mubr.f32.gmra.mrb[14].mxu1 %v2459_v33  ;;  %1742 = vmatprep.mubr.msk.f32.mxu0 %vm590_vm1, %v2470_v41 }
  0x87   : > { %1758 = vmatprep.mubr.msk.f32.mxu1 %vm590_vm1, %v2472_v42 }
  0x89   : > { %744 = vmatmul.mubr.f32.gmra.mrb[16].mxu0 %v2474_v43 }
  0x8a   : > { %937 = vmatmul.mubr.f32.gmra.mrb[16].mxu1 %v2481_v58  ;;  %1743 = vmatprep.mubr.msk.f32.mxu0 %vm590_vm1, %v2483_v59 }
  0x8b   : > { %1759 = vmatprep.mubr.msk.f32.mxu1 %vm590_vm1, %v2485_v2 }
  0x8d   : > { %749 = vmatmul.mubr.f32.gmra.mrb[18].mxu0 %v2501_v7  ;;  %v3089_v7 = vld [vmem:[#allocation35_spill] sm:$0xff] }
  0x8e   : > { %942 = vmatmul.mubr.f32.gmra.mrb[18].mxu1 %v2503_v48  ;;  %1744 = vmatprep.mubr.msk.f32.mxu0 %vm590_vm1, %v2505_v23 }
  0x8f   : > { %1760 = vmatprep.mubr.msk.f32.mxu1 %vm590_vm1, %v2517_v1  ;;  %v3091_v1 = vld [vmem:[#allocation40_spill] sm:$0xff] }
  0x91   : > { %754 = vmatmul.mubr.f32.gmra.mrb[20].mxu0 %v2519_v11  ;;  %v1200_v11 = vld [vmem:[%s3031_s9] sm:$0xff] }
  0x92   : > { %947 = vmatmul.mubr.f32.gmra.mrb[20].mxu1 %v2521_v12  ;;  %1745 = vmatprep.mubr.msk.f32.mxu0 %vm590_vm1, %v2532_v22  ;;  %v1201_v12 = vld [vmem:[%s3031_s9 + $0x8] sm:$0xff]  ;;  %v2044_v22 = vpack.c.bf16 %v1205_v19, %v1204_v18 }
  0x93   : > { %1761 = vmatprep.mubr.msk.f32.mxu1 %vm590_vm1, %v2534_v36  ;;  %v2036_v14 = vpack.c.bf16 %v1201_v12, %v1200_v11 }
  0x95   : > { %759 = vmatmul.mubr.f32.gmra.mrb[22].mxu0 %v2536_v49  ;;  %v3093_v49 = vld [vmem:[#allocation42_spill] sm:$0xff]  ;;  %2037 = vmatprep.subr.bf16.mxu1 %v2036_v14 }
  0x96   : > { %952 = vmatmul.mubr.f32.gmra.mrb[22].mxu1 %v3089_v7  ;;  %1746 = vmatprep.mubr.msk.f32.mxu0 %vm590_vm1, %v2545_v29 }
  0x97   : > { %1762 = vmatprep.mubr.msk.f32.mxu1 %vm590_vm1, %v3090_v53  ;;  %2039 = vmatpush3.bf16.msra.mxu1 %v2036_v14 }
  0x98   : > { %2041 = vmatprep.subr.bf16.mxu1 %v2040_v17 }
  0x99   : > { %764 = vmatmul.mubr.f32.gmra.mrb[24].mxu0 %v2560_v5 }
  0x9a   : > { %957 = vmatmul.mubr.f32.gmra.mrb[24].mxu1 %v2562_v34  ;;  %1747 = vmatprep.mubr.msk.f32.mxu0 %vm590_vm1, %v2564_v37  ;;  %v2731_v37 = vld [vmem:[#allocation2 + $0xf8] sm:$0xff] }
  0x9b   : > { %1763 = vmatprep.mubr.msk.f32.mxu1 %vm590_vm1, %v3091_v1  ;;  %2043 = vmatpush3.bf16.msra.mxu1 %v2040_v17 }
  0x9c   : > { %2045 = vmatprep.subr.bf16.mxu1 %v2044_v22 }
  0x9d   : > { %769 = vmatmul.mubr.f32.gmra.mrb[26].mxu0 %v3092_v55 }
  0x9e   : > { %962 = vmatmul.mubr.f32.gmra.mrb[26].mxu1 %v3093_v49  ;;  %1748 = vmatprep.mubr.msk.f32.mxu0 %vm590_vm1, %v2588_v4 }
  0x9f   : > { %1764 = vmatprep.mubr.msk.f32.mxu1 %vm590_vm1, %v2590_v54  ;;  %v1028_v54 = vld [vmem:[%s3029_s7 + $0x60] sm:$0xff]  ;;  %2047 = vmatpush3.bf16.msra.mxu1 %v2044_v22 }
  0xa0   : > { %v2028_v5 = vpack.c.bf16 %v1029_v0, %v1028_v54 }
  0xa1   : > { %774 = vmatmul.mubr.f32.gmra.mrb[28].mxu0 %v2723_v56 }
  0xa2   : > { %967 = vmatmul.mubr.f32.gmra.mrb[28].mxu1 %v2727_v57  ;;  %1749 = vmatprep.mubr.msk.f32.mxu0 %vm590_vm1, %v2729_v60 }
  0xa3   : > { %1765 = vmatprep.mubr.msk.f32.mxu1 %vm590_vm1, %v2731_v37  ;;  %2029 = vmatprep.subr.bf16.mxu0 %v2028_v5 }
  0xa4   : > { %2031 = vmatpush3.bf16.msra.mxu0 %v2028_v5 }
  0xa5   : > { %779 = vmatmul.mubr.f32.gmra.mrb[30].mxu0 %v2737_v62  ;;  %2033 = vmatprep.subr.bf16.mxu0 %v2032_v9 }
  0xa6   : > { %972 = vmatmul.mubr.f32.gmra.mrb[30].mxu1 %v2741_v63 }
  0xa8   : > { %2035 = vmatpush3.bf16.msra.mxu0 %v2032_v9 }
 0x13c   : > { %v705_v23 = vpop.f32.mrb[0].mxu0 }
 0x13d   : > { %v898_v24 = vpop.f32.mrb[0].mxu1  ;;  %v707_v26 = vpop.f32.mrb[1].mxu0 }
 0x13e   : > { %v899_v31 = vadd.f32 %v898_v24, %v705_v23  ;;  %v900_v32 = vpop.f32.mrb[1].mxu1 }
 0x140   : > { %v984_v33 = vadd.f32 %v2778_v25, %v899_v31  ;;  %v710_v36 = vpop.f32.mrb[2].mxu0 }
 0x141   : > { %v903_v41 = vpop.f32.mrb[2].mxu1  ;;  %v712_v42 = vpop.f32.mrb[3].mxu0 }
 0x142   : > { %v1000_v43 = vmax.f32 %v984_v33, 0.0  ;;  %v904_v48 = vadd.f32 %v903_v41, %v710_v36  ;;  %v905_v58 = vpop.f32.mrb[3].mxu1 }
 0x144   : > { %v985_v59 = vadd.f32 %v2778_v25, %v904_v48  ;;  %1880 = vmatprep.mubr.f32.mxu0 %v1000_v43  ;;  %v715_v2 = vpop.f32.mrb[4].mxu0 }
 0x145   : > { %v908_v34 = vpop.f32.mrb[4].mxu1  ;;  %v717_v28 = vpop.f32.mrb[5].mxu0 }
 0x146   : > { %v1001_v29 = vmax.f32 %v985_v59, 0.0  ;;  %v909_v30 = vadd.f32 %v908_v34, %v715_v2  ;;  %v910_v3 = vpop.f32.mrb[5].mxu1 }
 0x148   : > { %v986_v4 = vadd.f32 %v2778_v25, %v909_v30  ;;  %1881 = vmatmul.mubr.f32.vlgmr.msra.gmra.mrb[32].mxu0 %v1001_v29  ;;  %v720_v35 = vpop.f32.mrb[6].mxu0 }
 0x149   : > { %v913_v10 = vpop.f32.mrb[6].mxu1  ;;  %v722_v21 = vpop.f32.mrb[7].mxu0 }
 0x14a   : > { %v1002_v44 = vmax.f32 %v986_v4, 0.0  ;;  %v914_v16 = vadd.f32 %v913_v10, %v720_v35  ;;  %v915_v50 = vpop.f32.mrb[7].mxu1 }
 0x14c   : > { %v987_v61 = vadd.f32 %v2778_v25, %v914_v16  ;;  %1883 = vmatprep.mubr.f32.mxu0 %v1002_v44  ;;  %v725_v20 = vpop.f32.mrb[8].mxu0 }
 0x14d   : > { %v918_v38 = vpop.f32.mrb[8].mxu1  ;;  %v727_v27 = vpop.f32.mrb[9].mxu0 }
 0x14e   : > { %v1003_v39 = vmax.f32 %v987_v61, 0.0  ;;  %v919_v40 = vadd.f32 %v918_v38, %v725_v20  ;;  %v920_v45 = vpop.f32.mrb[9].mxu1 }
 0x150   : > { %v988_v46 = vadd.f32 %v2778_v25, %v919_v40  ;;  %1884 = vmatmul.mubr.f32.gmra.mrb[34].mxu0 %v1003_v39  ;;  %v730_v47 = vpop.f32.mrb[10].mxu0 }
 0x151   : > { %v923_v51 = vpop.f32.mrb[10].mxu1  ;;  %v732_v52 = vpop.f32.mrb[11].mxu0 }
 0x152   : > { %v1004_v7 = vmax.f32 %v988_v46, 0.0  ;;  %v924_v53 = vadd.f32 %v923_v51, %v730_v47  ;;  %v925_v1 = vpop.f32.mrb[11].mxu1 }
 0x154   : > { %v989_v55 = vadd.f32 %v2778_v25, %v924_v53  ;;  %1886 = vmatprep.mubr.f32.mxu0 %v1004_v7  ;;  %v735_v49 = vpop.f32.mrb[12].mxu0 }
 0x155   : > { %v928_v54 = vpop.f32.mrb[12].mxu1  ;;  %v737_v0 = vpop.f32.mrb[13].mxu0 }
 0x156   : > { %v1005_v5 = vmax.f32 %v989_v55, 0.0  ;;  %v929_v6 = vadd.f32 %v928_v54, %v735_v49  ;;  %v930_v8 = vpop.f32.mrb[13].mxu1 }
 0x158   : > { %v990_v9 = vadd.f32 %v2778_v25, %v929_v6  ;;  %1887 = vmatmul.mubr.f32.gmra.mrb[36].mxu0 %v1005_v5  ;;  %v740_v11 = vpop.f32.mrb[14].mxu0 }
 0x159   : > { %v933_v12 = vpop.f32.mrb[14].mxu1  ;;  %v742_v13 = vpop.f32.mrb[15].mxu0 }
 0x15a   : > { %v1006_v14 = vmax.f32 %v990_v9, 0.0  ;;  %v934_v15 = vadd.f32 %v933_v12, %v740_v11  ;;  %v935_v17 = vpop.f32.mrb[15].mxu1 }
 0x15c   : > { %v991_v18 = vadd.f32 %v2778_v25, %v934_v15  ;;  %1889 = vmatprep.mubr.f32.mxu0 %v1006_v14  ;;  %v745_v19 = vpop.f32.mrb[16].mxu0 }
 0x15d   : > { %v938_v22 = vpop.f32.mrb[16].mxu1  ;;  %v747_v23 = vpop.f32.mrb[17].mxu0 }
 0x15e   : > { %v1007_v24 = vmax.f32 %v991_v18, 0.0  ;;  %v939_v26 = vadd.f32 %v938_v22, %v745_v19  ;;  %v940_v31 = vpop.f32.mrb[17].mxu1  ;;  %v1206_v19 = vld [vmem:[%s3031_s9 + $0x30] sm:$0xff]  ;;  %v1207_v22 = vld [vmem:[%s3031_s9 + $0x38] sm:$0xff] }
 0x15f   : > { %v2048_v23 = vpack.c.bf16 %v1207_v22, %v1206_v19  ;;  %v3114_v22 = vld [vmem:[#allocation28_spill] sm:$0xff] }
 0x160   : > { %v992_v32 = vadd.f32 %v2778_v25, %v939_v26  ;;  %1890 = vmatmul.mubr.f32.gmra.mrb[38].mxu0 %v1007_v24  ;;  %v750_v33 = vpop.f32.mrb[18].mxu0  ;;  %v3094_v24 = vlaneseq }
 0x161   : > { %v943_v36 = vpop.f32.mrb[18].mxu1  ;;  %v752_v41 = vpop.f32.mrb[19].mxu0  ;;  %2049 = vmatprep.subr.bf16.mxu1 %v2048_v23 }
 0x162   : > { %v1008_v42 = vmax.f32 %v992_v32, 0.0  ;;  %v944_v43 = vadd.f32 %v943_v36, %v750_v33  ;;  %v945_v48 = vpop.f32.mrb[19].mxu1  ;;  %2051 = vmatpush3.bf16.msra.mxu1 %v2048_v23  ;;  %v1428_v26 = vshrl.u32 %v3094_v24, 7  ;;  %v3095_v41 = vld [vmem:[#allocation17_spill] sm:$0xff] }
 0x164   : > { %v993_v58 = vadd.f32 %v2778_v25, %v944_v43  ;;  %1892 = vmatprep.mubr.f32.mxu0 %v1008_v42  ;;  %v755_v59 = vpop.f32.mrb[20].mxu0  ;;  %v1429_v31 = vsub.s32 0, %v1428_v26  ;;  %v1433_v32 = vsub.s32 1, %v1428_v26  ;;  %v3096_v43 = vld [vmem:[#allocation16_spill] sm:$0xff] }
 0x165   : > { %v948_v2 = vpop.f32.mrb[20].mxu1  ;;  %v757_v34 = vpop.f32.mrb[21].mxu0 }
 0x166   : > { %v1009_v28 = vmax.f32 %v993_v58, 0.0  ;;  %v949_v29 = vadd.f32 %v948_v2, %v755_v59  ;;  %v950_v30 = vpop.f32.mrb[21].mxu1  ;;  %v3097_v58 = vld [vmem:[#allocation13_spill] sm:$0xff]  ;;  %v3098_v2 = vld [vmem:[#allocation12_spill] sm:$0xff] }
 0x167   : > { %v3100_v30 = vld [vmem:[#allocation18_spill] sm:$0xff] }
 0x168   : > { %v994_v3 = vadd.f32 %v2778_v25, %v949_v29  ;;  %1893 = vmatmul.mubr.f32.gmra.mrb[40].mxu0 %v1009_v28  ;;  %v760_v4 = vpop.f32.mrb[22].mxu0  ;;  %v3099_v28 = vld [vmem:[#allocation19_spill] sm:$0xff] }
 0x169   : > { %v953_v35 = vpop.f32.mrb[22].mxu1  ;;  %v762_v10 = vpop.f32.mrb[23].mxu0 }
 0x16a   : > { %v1010_v21 = vmax.f32 %v994_v3, 0.0  ;;  %v954_v44 = vadd.f32 %v953_v35, %v760_v4  ;;  %v955_v16 = vpop.f32.mrb[23].mxu1  ;;  %v3101_v4 = vld [vmem:[#allocation15_spill] sm:$0xff]  ;;  %v3102_v10 = vld [vmem:[#allocation14_spill] sm:$0xff] }
 0x16c   : > { %v995_v50 = vadd.f32 %v2778_v25, %v954_v44  ;;  %1895 = vmatprep.mubr.f32.mxu0 %v1010_v21  ;;  %v765_v61 = vpop.f32.mrb[24].mxu0 }
 0x16d   : > { %v958_v20 = vpop.f32.mrb[24].mxu1  ;;  %v767_v38 = vpop.f32.mrb[25].mxu0 }
 0x16e   : > { %v1011_v27 = vmax.f32 %v995_v50, 0.0  ;;  %v959_v39 = vadd.f32 %v958_v20, %v765_v61  ;;  %v960_v40 = vpop.f32.mrb[25].mxu1  ;;  %v3103_v50 = vld [vmem:[#allocation23_spill] sm:$0xff]  ;;  %v3104_v20 = vld [vmem:[#allocation22_spill] sm:$0xff] }
 0x170   : > { %v996_v45 = vadd.f32 %v2778_v25, %v959_v39  ;;  %1896 = vmatmul.mubr.f32.gmra.mrb[42].mxu0 %v1011_v27  ;;  %v770_v46 = vpop.f32.mrb[26].mxu0 }
 0x171   : > { %v963_v47 = vpop.f32.mrb[26].mxu1  ;;  %v772_v51 = vpop.f32.mrb[27].mxu0 }
 0x172   : > { %v1012_v52 = vmax.f32 %v996_v45, 0.0  ;;  %v964_v7 = vadd.f32 %v963_v47, %v770_v46  ;;  %v965_v53 = vpop.f32.mrb[27].mxu1 }
 0x174   : > { %v997_v1 = vadd.f32 %v2778_v25, %v964_v7  ;;  %1898 = vmatprep.mubr.f32.mxu0 %v1012_v52  ;;  %v775_v55 = vpop.f32.mrb[28].mxu0  ;;  %v3105_v52 = vld [vmem:[#allocation21_spill] sm:$0xff] }
 0x175   : > { %v968_v49 = vpop.f32.mrb[28].mxu1  ;;  %v777_v54 = vpop.f32.mrb[29].mxu0 }
 0x176   : > { %v1013_v0 = vmax.f32 %v997_v1, 0.0  ;;  %v969_v5 = vadd.f32 %v968_v49, %v775_v55  ;;  %v970_v6 = vpop.f32.mrb[29].mxu1  ;;  %v3106_v1 = vld [vmem:[#allocation20_spill] sm:$0xff]  ;;  %v3107_v49 = vld [vmem:[#allocation27_spill] sm:$0xff] }
 0x177   : > { %v3109_v6 = vld [vmem:[#allocation25_spill] sm:$0xff] }
 0x178   : > { %v998_v8 = vadd.f32 %v2778_v25, %v969_v5  ;;  %1899 = vmatmul.mubr.f32.gmra.mrb[44].mxu0 %v1013_v0  ;;  %v780_v9 = vpop.f32.mrb[30].mxu0  ;;  %v3108_v0 = vld [vmem:[#allocation26_spill] sm:$0xff] }
 0x179   : > { %v973_v11 = vpop.f32.mrb[30].mxu1  ;;  %v782_v12 = vpop.f32.mrb[31].mxu0 }
 0x17a   : > { %v1014_v13 = vmax.f32 %v998_v8, 0.0  ;;  %v974_v14 = vadd.f32 %v973_v11, %v780_v9  ;;  %v975_v15 = vpop.f32.mrb[31].mxu1  ;;  %v3110_v9 = vld [vmem:[#allocation24_spill] sm:$0xff]  ;;  %v3111_v12 = vld [vmem:[#allocation31_spill] sm:$0xff] }
 0x17b   : > { %v3112_v15 = vld [vmem:[#allocation30_spill] sm:$0xff] }
 0x17c   : > { %v999_v17 = vadd.f32 %v2778_v25, %v974_v14  ;;  %1901 = vmatprep.mubr.f32.mxu0 %v1014_v13  ;;  %v1425_v25 = vld [vmem:[%s3033_s11] sm:$0x3] }
 0x17d   : > { %v2806_v33 = vrot.slane %v1425_v25, %v1429_v31  ;;  %v2808_v36 = vrot.slane %v1425_v25, %v1433_v32  ;;  %v3115_v31 = vld [vmem:[#allocation37_spill] sm:$0xff] }
 0x17e   : > { %v1015_v18 = vmax.f32 %v999_v17, 0.0 }
 0x17f   : > { %v1441_v42 = vmul.f32 %v2806_v33, %v3095_v41  ;;  %v1442_v48 = vmul.f32 %v2808_v36, %v3096_v43  ;;  %v1437_v59 = vmul.f32 %v2806_v33, %v3097_v58  ;;  %v1438_v34 = vmul.f32 %v2808_v36, %v3098_v2  ;;  %v3116_v2 = vld [vmem:[#allocation34_spill] sm:$0xff] }
 0x180   : > { %1902 = vmatmul.mubr.f32.gmra.mrb[46].mxu0 %v1015_v18  ;;  %v1443_v29 = vmul.f32 %v2806_v33, %v3099_v28  ;;  %v1444_v3 = vmul.f32 %v2808_v36, %v3100_v30  ;;  %v1439_v35 = vmul.f32 %v2806_v33, %v3101_v4  ;;  %v1440_v21 = vmul.f32 %v2808_v36, %v3102_v10  ;;  %v3113_v18 = vld [vmem:[#allocation29_spill] sm:$0xff]  ;;  %v3118_v30 = vld [vmem:[#allocation32_spill] sm:$0xff]  ;;  %v3120_v10 = vld [vmem:[#allocation43_spill] sm:$0xff] }
 0x181   : > { %v1477_v44 = vsel %vm590_vm1, %v1442_v48, 0.0  ;;  %v1469_v16 = vsel %vm590_vm1, %v1438_v34, 0.0  ;;  %v1447_v61 = vmul.f32 %v2806_v33, %v3103_v50  ;;  %v1448_v38 = vmul.f32 %v2808_v36, %v3104_v20  ;;  %v3117_v28 = vld [vmem:[#allocation33_spill] sm:$0xff]  ;;  %v3119_v4 = vld [vmem:[#allocation44_spill] sm:$0xff] }
 0x182   : > { %v1478_v27 = vadd.f32 %v1477_v44, %v1441_v42  ;;  %v1470_v39 = vadd.f32 %v1469_v16, %v1437_v59  ;;  %v1481_v40 = vsel %vm590_vm1, %v1444_v3, 0.0  ;;  %v1473_v45 = vsel %vm590_vm1, %v1440_v21, 0.0 }
 0x183   : > { %v1482_v46 = vadd.f32 %v1481_v40, %v1443_v29  ;;  %v1474_v47 = vadd.f32 %v1473_v45, %v1439_v35  ;;  %v1489_v51 = vsel %vm590_vm1, %v1448_v38, 0.0  ;;  %v1445_v7 = vmul.f32 %v2806_v33, %v3105_v52 }
 0x184   : > { %1479 = vadd.xlane.f32.xlu1 %v1478_v27  ;;  %1471 = vadd.xlane.f32.xlu0 %v1470_v39  ;;  %v1490_v53 = vadd.f32 %v1489_v51, %v1447_v61  ;;  %v1446_v55 = vmul.f32 %v2808_v36, %v3106_v1  ;;  %v1451_v54 = vmul.f32 %v2806_v33, %v3107_v49  ;;  %v1767_v27 = vld [vmem:[%s3030_s8] ss:$0 sm:$0xff] }
 0x185   : > { %v1452_v5 = vmul.f32 %v2808_v36, %v3108_v0  ;;  %v1449_v8 = vmul.f32 %v2806_v33, %v3109_v6  ;;  %v1450_v11 = vmul.f32 %v2808_v36, %v3110_v9  ;;  %v1455_v13 = vmul.f32 %v2806_v33, %v3111_v12 }
 0x186   : > { %v1485_v14 = vsel %vm590_vm1, %v1446_v55, 0.0  ;;  %v1456_v17 = vmul.f32 %v2808_v36, %v3112_v15  ;;  %v1453_v19 = vmul.f32 %v2806_v33, %v3113_v18  ;;  %v1454_v23 = vmul.f32 %v2808_v36, %v3114_v22 }
 0x187   : > { %v1486_v24 = vadd.f32 %v1485_v14, %v1445_v7  ;;  %v1497_v26 = vsel %vm590_vm1, %v1452_v5, 0.0  ;;  %v1493_v25 = vsel %vm590_vm1, %v1450_v11, 0.0  ;;  %v1459_v32 = vmul.f32 %v2806_v33, %v3115_v31 }
 0x188   : > { %1483 = vadd.xlane.f32.xlu1 %v1482_v46  ;;  %1475 = vadd.xlane.f32.xlu0 %v1474_v47  ;;  %v1498_v41 = vadd.f32 %v1497_v26, %v1451_v54  ;;  %v1494_v42 = vadd.f32 %v1493_v25, %v1449_v8  ;;  %v1505_v43 = vsel %vm590_vm1, %v1456_v17, 0.0  ;;  %v1501_v48 = vsel %vm590_vm1, %v1454_v23, 0.0 }
 0x189   : > { %v1506_v58 = vadd.f32 %v1505_v43, %v1455_v13  ;;  %v1502_v59 = vadd.f32 %v1501_v48, %v1453_v19  ;;  %v1460_v34 = vmul.f32 %v2808_v36, %v3116_v2  ;;  %v1457_v29 = vmul.f32 %v2806_v33, %v3117_v28 }
 0x18a   : > { %v1458_v3 = vmul.f32 %v2808_v36, %v3118_v30  ;;  %v1463_v35 = vmul.f32 %v2806_v33, %v3119_v4  ;;  %v1464_v21 = vmul.f32 %v2808_v36, %v3120_v10 }
 0x18b   : > { %v1513_v44 = vsel %vm590_vm1, %v1460_v34, 0.0 }
 0x18c   : > { %1491 = vadd.xlane.f32.xlu1 %v1490_v53  ;;  %1487 = vadd.xlane.f32.xlu0 %v1486_v24  ;;  %v1514_v16 = vadd.f32 %v1513_v44, %v1459_v32  ;;  %v1509_v50 = vsel %vm590_vm1, %v1458_v3, 0.0  ;;  %v1521_v61 = vsel %vm590_vm1, %v1464_v21, 0.0  ;;  %v549_v21 = vmul.f32 %v2729_v60, %v2731_v37  ;;  %v3123_v60 = vld [vmem:[#allocation45_spill] sm:$0xff] }
 0x18d   : > { %v1510_v20 = vadd.f32 %v1509_v50, %v1457_v29  ;;  %v1522_v38 = vadd.f32 %v1521_v61, %v1463_v35  ;;  %v548_v44 = vmul.f32 %v2737_v62, %v2741_v63  ;;  %v546_v61 = vmul.f32 %v2723_v56, %v2727_v57 }
 0x18e   : > { %v1466_v37 = vmul.f32 %v2808_v36, %v3123_v60 }
 0x18f   : > { %v1465_v63 = vmul.f32 %v2806_v33, %v546_v61 }
 0x190   : > { %1499 = vadd.xlane.f32.xlu1 %v1498_v41  ;;  %1495 = vadd.xlane.f32.xlu0 %v1494_v42  ;;  %v1525_v56 = vsel %vm590_vm1, %v1466_v37, 0.0 }
 0x191   : > { %v1526_v57 = vadd.f32 %v1525_v56, %v1465_v63 }
 0x194   : > { %1507 = vadd.xlane.f32.xlu1 %v1506_v58  ;;  %1503 = vadd.xlane.f32.xlu0 %v1502_v59 }
 0x198   : > { %1515 = vadd.xlane.f32.xlu1 %v1514_v16  ;;  %1511 = vadd.xlane.f32.xlu0 %v1510_v20  ;;  %v3121_v16 = vld [vmem:[#allocation38_spill] sm:$0xff]  ;;  %v3122_v20 = vld [vmem:[#allocation39_spill] sm:$0xff] }
 0x199   : > { %v1462_v50 = vmul.f32 %v2808_v36, %v3121_v16 }
 0x19c   : > { %1523 = vadd.xlane.f32.xlu1 %v1522_v38  ;;  %v1461_v38 = vmul.f32 %v2806_v33, %v3122_v20 }
 0x21b   : > { %v1882_v39 = vpop.f32.mrb[32].mxu0 }
 0x21c   : > { %v1111_v40 = vadd.f32 %v1882_v39, %v1767_v27  ;;  %v1105_v45 = vpop.f32.mrb[33].mxu0 }
 0x21d   : > { %v1106_v46 = vadd.f32 %v1767_v27, %v1105_v45  ;;  %v1467_v45 = vmul.f32 %v2806_v33, %v548_v44  ;;  %v2922_v33 = vld [vmem:[%s3034_s12] ss:$0 sm:$0xff] }
 0x21e   : > { %v1185_v51 = vmax.f32 %v1111_v40, 0.0  ;;  %v1468_v40 = vmul.f32 %v2808_v36, %v549_v21 }
 0x21f   : > { %v1184_v47 = vmax.f32 %v1106_v46, 0.0 }
 0x220   : > { %v1529_v62 = vsel %vm590_vm1, %v1468_v40, 0.0 }
 0x221   : > { %1920 = vmatprep.mubr.msk.f32.mxu1 %vm1215_vm2, %v1184_v47  ;;  %v1530_v46 = vadd.f32 %v1529_v62, %v1467_v45  ;;  %v2915_v47 = vld [vmem:[%s3032_s10] ss:$0 sm:$0xff] }
 0x222   : > { %1921 = vmatmul.mubr.msk.f32.vlgmr.msra.gmra.mrb[32].mxu1 %vm1215_vm2, %v1185_v51 }
 0x223   : > { %v1885_v52 = vpop.f32.mrb[34].mxu0  ;;  %1531 = vadd.xlane.f32.xlu1 %v1530_v46 }
 0x224   : > { %v1121_v7 = vadd.f32 %v1885_v52, %v1767_v27  ;;  %v1115_v53 = vpop.f32.mrb[35].mxu0 }
 0x225   : > { %v1116_v1 = vadd.f32 %v1767_v27, %v1115_v53 }
 0x226   : > { %v1187_v49 = vmax.f32 %v1121_v7, 0.0 }
 0x227   : > { %v1186_v55 = vmax.f32 %v1116_v1, 0.0 }
 0x229   : > { %1923 = vmatprep.mubr.msk.f32.mxu1 %vm1215_vm2, %v1186_v55 }
 0x22a   : > { %1924 = vmatmul.mubr.msk.f32.gmra.mrb[34].mxu1 %vm1215_vm2, %v1187_v49 }
 0x22b   : > { %v1888_v54 = vpop.f32.mrb[36].mxu0 }
 0x22c   : > { %v1131_v0 = vadd.f32 %v1888_v54, %v1767_v27  ;;  %v1125_v5 = vpop.f32.mrb[37].mxu0 }
 0x22d   : > { %v1126_v6 = vadd.f32 %v1767_v27, %v1125_v5 }
 0x22e   : > { %v1189_v9 = vmax.f32 %v1131_v0, 0.0 }
 0x22f   : > { %v1188_v8 = vmax.f32 %v1126_v6, 0.0 }
 0x231   : > { %1926 = vmatprep.mubr.msk.f32.mxu1 %vm1215_vm2, %v1188_v8 }
 0x232   : > { %1927 = vmatmul.mubr.msk.f32.gmra.mrb[36].mxu1 %vm1215_vm2, %v1189_v9 }
 0x233   : > { %v1891_v11 = vpop.f32.mrb[38].mxu0 }
 0x234   : > { %v1141_v12 = vadd.f32 %v1891_v11, %v1767_v27  ;;  %v1135_v13 = vpop.f32.mrb[39].mxu0 }
 0x235   : > { %v1136_v14 = vadd.f32 %v1767_v27, %v1135_v13 }
 0x236   : > { %v1191_v17 = vmax.f32 %v1141_v12, 0.0 }
 0x237   : > { %v1190_v15 = vmax.f32 %v1136_v14, 0.0 }
 0x239   : > { %1929 = vmatprep.mubr.msk.f32.mxu1 %vm1215_vm2, %v1190_v15 }
 0x23a   : > { %1930 = vmatmul.mubr.msk.f32.gmra.mrb[38].mxu1 %vm1215_vm2, %v1191_v17 }
 0x23b   : > { %v1894_v18 = vpop.f32.mrb[40].mxu0 }
 0x23c   : > { %v1151_v19 = vadd.f32 %v1894_v18, %v1767_v27  ;;  %v1145_v22 = vpop.f32.mrb[41].mxu0 }
 0x23d   : > { %v1146_v23 = vadd.f32 %v1767_v27, %v1145_v22 }
 0x23e   : > { %v1193_v26 = vmax.f32 %v1151_v19, 0.0 }
 0x23f   : > { %v1192_v24 = vmax.f32 %v1146_v23, 0.0 }
 0x241   : > { %1932 = vmatprep.mubr.msk.f32.mxu1 %vm1215_vm2, %v1192_v24 }
 0x242   : > { %1933 = vmatmul.mubr.msk.f32.gmra.mrb[40].mxu1 %vm1215_vm2, %v1193_v26 }
 0x243   : > { %v1897_v25 = vpop.f32.mrb[42].mxu0 }
 0x244   : > { %v1161_v31 = vadd.f32 %v1897_v25, %v1767_v27  ;;  %v1155_v32 = vpop.f32.mrb[43].mxu0 }
 0x245   : > { %v1156_v41 = vadd.f32 %v1767_v27, %v1155_v32 }
 0x246   : > { %v1195_v43 = vmax.f32 %v1161_v31, 0.0 }
 0x247   : > { %v1194_v42 = vmax.f32 %v1156_v41, 0.0 }
 0x249   : > { %1935 = vmatprep.mubr.msk.f32.mxu1 %vm1215_vm2, %v1194_v42 }
 0x24a   : > { %1936 = vmatmul.mubr.msk.f32.gmra.mrb[42].mxu1 %vm1215_vm2, %v1195_v43 }
 0x24b   : > { %v1900_v48 = vpop.f32.mrb[44].mxu0 }
 0x24c   : > { %v1171_v58 = vadd.f32 %v1900_v48, %v1767_v27  ;;  %v1165_v59 = vpop.f32.mrb[45].mxu0 }
 0x24d   : > { %v1166_v2 = vadd.f32 %v1767_v27, %v1165_v59 }
 0x24e   : > { %v1197_v28 = vmax.f32 %v1171_v58, 0.0 }
 0x24f   : > { %v1196_v34 = vmax.f32 %v1166_v2, 0.0 }
 0x251   : > { %1938 = vmatprep.mubr.msk.f32.mxu1 %vm1215_vm2, %v1196_v34 }
 0x252   : > { %1939 = vmatmul.mubr.msk.f32.gmra.mrb[44].mxu1 %vm1215_vm2, %v1197_v28 }
 0x253   : > { %v1903_v29 = vpop.f32.mrb[46].mxu0 }
 0x254   : > { %v1181_v30 = vadd.f32 %v1903_v29, %v1767_v27  ;;  %v1175_v3 = vpop.f32.mrb[47].mxu0 }
 0x255   : > { %v1176_v4 = vadd.f32 %v1767_v27, %v1175_v3  ;;  %v1517_v27 = vsel %vm590_vm1, %v1462_v50, 0.0 }
 0x256   : > { %v1199_v10 = vmax.f32 %v1181_v30, 0.0  ;;  %v1518_v39 = vadd.f32 %v1517_v27, %v1461_v38 }
 0x257   : > { %v1198_v35 = vmax.f32 %v1176_v4, 0.0 }
 0x258   : > { %1519 = vadd.xlane.f32.xlu0 %v1518_v39 }
 0x259   : > { %1941 = vmatprep.mubr.msk.f32.mxu1 %vm1215_vm2, %v1198_v35 }
 0x25a   : > { %1942 = vmatmul.mubr.msk.f32.gmra.mrb[46].mxu1 %vm1215_vm2, %v1199_v10 }
 0x25c   : > { %1527 = vadd.xlane.f32.xlu0 %v1526_v57 }
 0x2f5   : > { %v1922_v51 = vpop.f32.mrb[32].mxu1 }
 0x2f6   : > { %v1336_v52 = vadd.f32 %v1922_v51, %v2915_v47  ;;  %v1330_v36 = vpop.f32.mrb[33].mxu1 }
 0x2f7   : > { %v1331_v7 = vadd.f32 %v2915_v47, %v1330_v36 }
 0x2f8   : > { %v1410_v53 = vmax.f32 %v1336_v52, 0.0 }
 0x2f9   : > { %v1409_v1 = vmax.f32 %v1331_v7, 0.0 }
 0x2fa   : > { %v1541_v55 = vmul.f32 %v2922_v33, %v1410_v53 }
 0x2fb   : > { %v1540_v49 = vmul.f32 %v2922_v33, %v1409_v1 }
 0x2fc   : > { %v1559_v54 = vsel %vm590_vm1, %v1541_v55, 0.0 }
 0x2fd   : > { %1560 = vadd.xlane.f32.xlu1 %v1559_v54  ;;  %v1925_v0 = vpop.f32.mrb[34].mxu1  ;;  %v1556_v5 = vsel %vm590_vm1, %v1540_v49, 0.0 }
 0x2fe   : > { %v1346_v6 = vadd.f32 %v1925_v0, %v2915_v47  ;;  %v1340_v8 = vpop.f32.mrb[35].mxu1  ;;  %1557 = vadd.xlane.f32.xlu0 %v1556_v5 }
 0x2ff   : > { %v1341_v9 = vadd.f32 %v2915_v47, %v1340_v8 }
 0x300   : > { %v1412_v11 = vmax.f32 %v1346_v6, 0.0 }
 0x301   : > { %v1411_v12 = vmax.f32 %v1341_v9, 0.0 }
 0x302   : > { %v1543_v13 = vmul.f32 %v2922_v33, %v1412_v11 }
 0x303   : > { %v1542_v14 = vmul.f32 %v2922_v33, %v1411_v12 }
 0x304   : > { %v1565_v15 = vsel %vm590_vm1, %v1543_v13, 0.0 }
 0x305   : > { %1566 = vadd.xlane.f32.xlu1 %v1565_v15  ;;  %v1928_v17 = vpop.f32.mrb[36].mxu1  ;;  %v1562_v18 = vsel %vm590_vm1, %v1542_v14, 0.0  ;;  %v1480_v15 = vpop.xlane.xlu1 %1479 }
 0x306   : > { %v1356_v19 = vadd.f32 %v1928_v17, %v2915_v47  ;;  %v1350_v22 = vpop.f32.mrb[37].mxu1  ;;  %1563 = vadd.xlane.f32.xlu0 %v1562_v18  ;;  %v1472_v17 = vpop.xlane.xlu0 %1471 }
 0x307   : > { %v1351_v23 = vadd.f32 %v2915_v47, %v1350_v22 }
 0x308   : > { %v1414_v24 = vmax.f32 %v1356_v19, 0.0 }
 0x309   : > { %v1413_v26 = vmax.f32 %v1351_v23, 0.0  ;;  %v1484_v18 = vpop.xlane.xlu1 %1483 }
 0x30a   : > { %v1545_v25 = vmul.f32 %v2922_v33, %v1414_v24  ;;  %v1476_v19 = vpop.xlane.xlu0 %1475 }
 0x30b   : > { %v1544_v31 = vmul.f32 %v2922_v33, %v1413_v26 }
 0x30c   : > { %v1571_v32 = vsel %vm590_vm1, %v1545_v25, 0.0 }
 0x30d   : > { %1572 = vadd.xlane.f32.xlu1 %v1571_v32  ;;  %v1931_v41 = vpop.f32.mrb[38].mxu1  ;;  %v1568_v42 = vsel %vm590_vm1, %v1544_v31, 0.0  ;;  %v1492_v22 = vpop.xlane.xlu1 %1491 }
 0x30e   : > { %v1366_v43 = vadd.f32 %v1931_v41, %v2915_v47  ;;  %v1360_v48 = vpop.f32.mrb[39].mxu1  ;;  %1569 = vadd.xlane.f32.xlu0 %v1568_v42  ;;  %v1488_v23 = vpop.xlane.xlu0 %1487 }
 0x30f   : > { %v1361_v58 = vadd.f32 %v2915_v47, %v1360_v48  ;;  %v2970_v48 = vld [vmem:[#allocation7] ss:$0 sm:$0xff] }
 0x310   : > { %v1416_v59 = vmax.f32 %v1366_v43, 0.0 }
 0x311   : > { %v1415_v2 = vmax.f32 %v1361_v58, 0.0  ;;  %v1500_v24 = vpop.xlane.xlu1 %1499 }
 0x312   : > { %v1547_v34 = vmul.f32 %v2922_v33, %v1416_v59 }
 0x313   : > { %v1546_v28 = vmul.f32 %v2922_v33, %v1415_v2 }
 0x314   : > { %v1577_v29 = vsel %vm590_vm1, %v1547_v34, 0.0 }
 0x315   : > { %1578 = vadd.xlane.f32.xlu1 %v1577_v29  ;;  %v1934_v30 = vpop.f32.mrb[40].mxu1  ;;  %v1574_v3 = vsel %vm590_vm1, %v1546_v28, 0.0  ;;  %v1508_v26 = vpop.xlane.xlu1 %1507 }
 0x316   : > { %v1376_v4 = vadd.f32 %v1934_v30, %v2915_v47  ;;  %v1370_v35 = vpop.f32.mrb[41].mxu1  ;;  %1575 = vadd.xlane.f32.xlu0 %v1574_v3 }
 0x317   : > { %v1371_v10 = vadd.f32 %v2915_v47, %v1370_v35 }
 0x318   : > { %v1418_v21 = vmax.f32 %v1376_v4, 0.0 }
 0x319   : > { %v1417_v44 = vmax.f32 %v1371_v10, 0.0  ;;  %v1516_v31 = vpop.xlane.xlu1 %1515 }
 0x31a   : > { %v1549_v16 = vmul.f32 %v2922_v33, %v1418_v21 }
 0x31b   : > { %v1548_v50 = vmul.f32 %v2922_v33, %v1417_v44 }
 0x31c   : > { %v1583_v61 = vsel %vm590_vm1, %v1549_v16, 0.0 }
 0x31d   : > { %1584 = vadd.xlane.f32.xlu1 %v1583_v61  ;;  %v1937_v20 = vpop.f32.mrb[42].mxu1  ;;  %v1580_v38 = vsel %vm590_vm1, %v1548_v50, 0.0  ;;  %v1524_v32 = vpop.xlane.xlu1 %1523 }
 0x31e   : > { %v1386_v27 = vadd.f32 %v1937_v20, %v2915_v47  ;;  %v1380_v39 = vpop.f32.mrb[43].mxu1  ;;  %1581 = vadd.xlane.f32.xlu0 %v1580_v38 }
 0x31f   : > { %v1381_v40 = vadd.f32 %v2915_v47, %v1380_v39 }
 0x320   : > { %v1420_v45 = vmax.f32 %v1386_v27, 0.0 }
 0x321   : > { %v1419_v60 = vmax.f32 %v1381_v40, 0.0  ;;  %v1532_v42 = vpop.xlane.xlu1 %1531 }
 0x322   : > { %v1551_v37 = vmul.f32 %v2922_v33, %v1420_v45 }
 0x323   : > { %v1550_v62 = vmul.f32 %v2922_v33, %v1419_v60 }
 0x324   : > { %v1589_v63 = vsel %vm590_vm1, %v1551_v37, 0.0 }
 0x325   : > { %1590 = vadd.xlane.f32.xlu1 %v1589_v63  ;;  %v1940_v46 = vpop.f32.mrb[44].mxu1  ;;  %v1586_v56 = vsel %vm590_vm1, %v1550_v62, 0.0 }
 0x326   : > { %v1396_v57 = vadd.f32 %v1940_v46, %v2915_v47  ;;  %v1390_v51 = vpop.f32.mrb[45].mxu1  ;;  %1587 = vadd.xlane.f32.xlu0 %v1586_v56 }
 0x327   : > { %v1391_v52 = vadd.f32 %v2915_v47, %v1390_v51 }
 0x328   : > { %v1422_v36 = vmax.f32 %v1396_v57, 0.0 }
 0x329   : > { %v1421_v7 = vmax.f32 %v1391_v52, 0.0 }
 0x32a   : > { %v1553_v53 = vmul.f32 %v2922_v33, %v1422_v36 }
 0x32b   : > { %v1552_v1 = vmul.f32 %v2922_v33, %v1421_v7 }
 0x32c   : > { %v1595_v55 = vsel %vm590_vm1, %v1553_v53, 0.0 }
 0x32d   : > { %1596 = vadd.xlane.f32.xlu1 %v1595_v55  ;;  %v1943_v49 = vpop.f32.mrb[46].mxu1  ;;  %v1592_v54 = vsel %vm590_vm1, %v1552_v1, 0.0 }
 0x32e   : > { %v1406_v0 = vadd.f32 %v1943_v49, %v2915_v47  ;;  %v1400_v5 = vpop.f32.mrb[47].mxu1  ;;  %1593 = vadd.xlane.f32.xlu0 %v1592_v54 }
 0x32f   : > { %v1401_v6 = vadd.f32 %v2915_v47, %v1400_v5  ;;  %v1496_v47 = vpop.xlane.xlu0 %1495 }
 0x330   : > { %v1424_v8 = vmax.f32 %v1406_v0, 0.0 }
 0x331   : > { %v1423_v9 = vmax.f32 %v1401_v6, 0.0 }
 0x332   : > { %v1555_v11 = vmul.f32 %v2922_v33, %v1424_v8 }
 0x333   : > { %v1554_v12 = vmul.f32 %v2922_v33, %v1423_v9  ;;  %v1504_v25 = vpop.xlane.xlu0 %1503 }
 0x334   : > { %v1601_v13 = vsel %vm590_vm1, %v1555_v11, 0.0 }
 0x335   : > { %1602 = vadd.xlane.f32.xlu1 %v1601_v13  ;;  %v1598_v14 = vsel %vm590_vm1, %v1554_v12, 0.0 }
 0x336   : > { %1599 = vadd.xlane.f32.xlu0 %v1598_v14 }
 0x337   : > { %v1512_v33 = vpop.xlane.xlu0 %1511 }
 0x33b   : > { %v1520_v41 = vpop.xlane.xlu0 %1519 }
 0x33f   : > { %v1528_v43 = vpop.xlane.xlu0 %1527 }
 0x38a   : > { %v1561_v58 = vpop.xlane.xlu1 %1560 }
 0x38b   : > { %v1605_v59 = vadd.f32 %v1561_v58, %v1476_v19  ;;  %v1558_v2 = vpop.xlane.xlu0 %1557 }
 0x38c   : > { %v1604_v34 = vadd.f32 %v1558_v2, %v1472_v17 }
 0x38d   : > { %v1628_v28 = vadd.f32 %v2970_v48, %v1605_v59 }
 0x38e   : > { %v1627_v29 = vadd.f32 %v2970_v48, %v1604_v34 }
 0x38f   : > { %1645 = vst.msk [vmem:[%s3124_s18 + $0x8] sm:$0xff] %vm1643_vm3, %v1628_v28 }
 0x390   : > { %1644 = vst.msk [vmem:[%s3124_s18] sm:$0xff] %vm1643_vm3, %v1627_v29 }
 0x392   : > { %v1567_v30 = vpop.xlane.xlu1 %1566 }
 0x393   : > { %v1607_v3 = vadd.f32 %v1567_v30, %v1484_v18  ;;  %v1564_v4 = vpop.xlane.xlu0 %1563 }
 0x394   : > { %v1606_v35 = vadd.f32 %v1564_v4, %v1480_v15 }
 0x395   : > { %v1630_v10 = vadd.f32 %v2970_v48, %v1607_v3 }
 0x396   : > { %v1629_v21 = vadd.f32 %v2970_v48, %v1606_v35 }
 0x397   : > { %1647 = vst.msk [vmem:[%s3124_s18 + $0x18] sm:$0xff] %vm1643_vm3, %v1630_v10 }
 0x398   : > { %1646 = vst.msk [vmem:[%s3124_s18 + $0x10] sm:$0xff] %vm1643_vm3, %v1629_v21 }
 0x39a   : > { %v1573_v44 = vpop.xlane.xlu1 %1572 }
 0x39b   : > { %v1609_v16 = vadd.f32 %v1573_v44, %v1492_v22  ;;  %v1570_v50 = vpop.xlane.xlu0 %1569 }
 0x39c   : > { %v1608_v61 = vadd.f32 %v1570_v50, %v1488_v23 }
 0x39d   : > { %v1632_v20 = vadd.f32 %v2970_v48, %v1609_v16 }
 0x39e   : > { %v1631_v38 = vadd.f32 %v2970_v48, %v1608_v61 }
 0x39f   : > { %1649 = vst.msk [vmem:[%s3124_s18 + $0x28] sm:$0xff] %vm1643_vm3, %v1632_v20 }
 0x3a0   : > { %1648 = vst.msk [vmem:[%s3124_s18 + $0x20] sm:$0xff] %vm1643_vm3, %v1631_v38 }
 0x3a2   : > { %v1579_v27 = vpop.xlane.xlu1 %1578 }
 0x3a3   : > { %v1611_v39 = vadd.f32 %v1579_v27, %v1500_v24  ;;  %v1576_v40 = vpop.xlane.xlu0 %1575 }
 0x3a4   : > { %v1610_v45 = vadd.f32 %v1576_v40, %v1496_v47 }
 0x3a5   : > { %v1634_v60 = vadd.f32 %v2970_v48, %v1611_v39 }
 0x3a6   : > { %v1633_v37 = vadd.f32 %v2970_v48, %v1610_v45 }
 0x3a7   : > { %1651 = vst.msk [vmem:[%s3124_s18 + $0x38] sm:$0xff] %vm1643_vm3, %v1634_v60 }
 0x3a8   : > { %1650 = vst.msk [vmem:[%s3124_s18 + $0x30] sm:$0xff] %vm1643_vm3, %v1633_v37 }
 0x3aa   : > { %v1585_v62 = vpop.xlane.xlu1 %1584 }
 0x3ab   : > { %v1613_v63 = vadd.f32 %v1585_v62, %v1508_v26  ;;  %v1582_v46 = vpop.xlane.xlu0 %1581 }
 0x3ac   : > { %v1612_v56 = vadd.f32 %v1582_v46, %v1504_v25 }
 0x3ad   : > { %v1636_v57 = vadd.f32 %v2970_v48, %v1613_v63 }
 0x3ae   : > { %v1635_v51 = vadd.f32 %v2970_v48, %v1612_v56 }
 0x3af   : > { %1653 = vst.msk [vmem:[%s3124_s18 + $0x48] sm:$0xff] %vm1643_vm3, %v1636_v57 }
 0x3b0   : > { %1652 = vst.msk [vmem:[%s3124_s18 + $0x40] sm:$0xff] %vm1643_vm3, %v1635_v51 }
 0x3b2   : > { %v1591_v52 = vpop.xlane.xlu1 %1590 }
 0x3b3   : > { %v1615_v36 = vadd.f32 %v1591_v52, %v1516_v31  ;;  %v1588_v7 = vpop.xlane.xlu0 %1587 }
 0x3b4   : > { %v1614_v53 = vadd.f32 %v1588_v7, %v1512_v33 }
 0x3b5   : > { %v1638_v1 = vadd.f32 %v2970_v48, %v1615_v36 }
 0x3b6   : > { %v1637_v55 = vadd.f32 %v2970_v48, %v1614_v53 }
 0x3b7   : > { %1655 = vst.msk [vmem:[%s3124_s18 + $0x58] sm:$0xff] %vm1643_vm3, %v1638_v1 }
 0x3b8   : > { %1654 = vst.msk [vmem:[%s3124_s18 + $0x50] sm:$0xff] %vm1643_vm3, %v1637_v55 }
 0x3ba   : > { %v1597_v49 = vpop.xlane.xlu1 %1596 }
 0x3bb   : > { %v1617_v54 = vadd.f32 %v1597_v49, %v1524_v32  ;;  %v1594_v0 = vpop.xlane.xlu0 %1593 }
 0x3bc   : > { %v1616_v5 = vadd.f32 %v1594_v0, %v1520_v41 }
 0x3bd   : > { %v1640_v6 = vadd.f32 %v2970_v48, %v1617_v54 }
 0x3be   : > { %v1639_v8 = vadd.f32 %v2970_v48, %v1616_v5 }
 0x3bf   : > { %1657 = vst.msk [vmem:[%s3124_s18 + $0x68] sm:$0xff] %vm1643_vm3, %v1640_v6 }
 0x3c0   : > { %1656 = vst.msk [vmem:[%s3124_s18 + $0x60] sm:$0xff] %vm1643_vm3, %v1639_v8 }
 0x3c2   : > { %v1603_v9 = vpop.xlane.xlu1 %1602 }
 0x3c3   : > { %v1619_v11 = vadd.f32 %v1603_v9, %v1532_v42  ;;  %v1600_v12 = vpop.xlane.xlu0 %1599 }
 0x3c4   : > { %v1618_v13 = vadd.f32 %v1600_v12, %v1528_v43 }
 0x3c5   : > { %v1642_v14 = vadd.f32 %v2970_v48, %v1619_v11 }
 0x3c6   : > { %v1641_v15 = vadd.f32 %v2970_v48, %v1618_v13 }
 0x3c7   : > { %1659 = vst.msk [vmem:[%s3124_s18 + $0x78] sm:$0xff] %vm1643_vm3, %v1642_v14 }
 0x3c8   : > { %1658 = vst.msk [vmem:[%s3124_s18 + $0x70] sm:$0xff] %vm1643_vm3, %v1641_v15 }
 0x3c9 PF: > { %s3125_s17 = sld [smem:[#allocation9_spill]] }
 0x3cf   : > { %s36_s13 = sadd.s32 1, %s3125_s17  }
 0x3d0   : > { %p33_p1 = scmp.ge.s32.totalorder %s36_s13, 4  }
 0x3d2   :  { %35 = sbr.rel (!%p33_p1) target bundleno = 27 (0x1b), region = 117 }

</bundles_post_ra>
